<compile_context>
chip_gen: v6e
topology: v6e:2x2x1
jax: 0.10.0
libtpu: 0.0.40
codegen_flags: <defaults>
</compile_context>

<pallas_src>
import jax
import jax.numpy as jnp
import numpy as np
from jax.experimental import pallas as pl
from jax.experimental.pallas import tpu as pltpu

INPUT_SIZE = 1
HIDDEN = 128
HORIZON = 1
NUM_LAYERS = 4
SEQ = 8
BATCH = 2


def rnn_kernel(src_ref, w_ih0_ref, w_hh0_ref, w_cat_ref, b_ref,
               w_fc_ref, b_fc_ref, out_ref, pre_scratch, seq_scratch):
    S, I = src_ref.shape
    Lm1, H2, H = w_cat_ref.shape
    L = Lm1 + 1
    horizon = b_fc_ref.shape[1]

    # ---- layer-0 input->hidden projections for the whole sequence ----------
    # I = 1 -> VPU broadcast multiply; fused (b_ih0 + b_hh0) added once.
    # Entirely off the serial recurrence chain.
    x = src_ref[...]                                        # (S, I)
    pre0 = jnp.zeros((S, H), jnp.float32)
    for i in range(I):
        pre0 = pre0 + x[:, i:i + 1] * w_ih0_ref[i:i + 1, :]
    pre_scratch[...] = pre0 + b_ref[0, :, :]

    # Hoist fused biases for layers 1..L-1 into vregs once (off-chain loads).
    bias = [None] + [b_ref[l, :, :] for l in range(1, L)]   # each (1, H) f32

    # Per-layer hidden state, carried in vregs.  h[l] always holds the most
    # recently computed timestep for layer l (zeros == h[l][-1]).
    h = [jnp.zeros((1, H), jnp.float32) for _ in range(L)]

    # ---- wavefront schedule: k = l + t -------------------------------------
    # All cells in wavefront k read only wavefront k-1 results, so their
    # matmuls + tanh are independent; serial chain = S + L - 1 = 11 steps.
    for k in range(S + L - 1):                              # static unroll
        new_h = {}
        for l in range(L):                                  # static unroll
            t = k - l
            if 0 <= t < S:
                if l == 0:
                    # pre0[t] is independent of the h chain.
                    z = pre_scratch[pl.ds(t, 1), :] + jnp.dot(
                        h[0].astype(jnp.bfloat16), w_hh0_ref[...],
                        preferred_element_type=jnp.float32)
                else:
                    # fused ih+hh: (1, 2H) @ (2H, H), single K=256 MXU pass.
                    inp = jnp.concatenate([h[l - 1], h[l]], axis=-1)
                    z = bias[l] + jnp.dot(
                        inp.astype(jnp.bfloat16), w_cat_ref[l - 1, :, :],
                        preferred_element_type=jnp.float32)
                new_h[l] = jnp.tanh(z)                      # f32 on the EUP
        for l, v in new_h.items():                          # commit wavefront
            h[l] = v
        t_top = k - (L - 1)
        if 0 <= t_top < S:                                  # top-layer output
            seq_scratch[pl.ds(t_top, 1), :] = h[L - 1]      # off-chain store

    # ---- fc head on the VPU/XLU: lane-broadcast multiply + lane reduction --
    seq = seq_scratch[...]                                  # (S, H) f32
    cols = [jnp.sum(seq * w_fc_ref[j:j + 1, :], axis=-1, keepdims=True)
            for j in range(horizon)]
    y = cols[0] if horizon == 1 else jnp.concatenate(cols, axis=1)
    out_ref[...] = y + b_fc_ref[...]


def _full(shape):
    n = len(shape)
    return pl.BlockSpec(shape, lambda i, _n=n: (0,) * _n)


def rnn_forward(src, params):
    w_ih0, b_ih0, w_ih, b_ih, w_hh, b_hh, w_fc, b_fc = params
    S, B, I = src.shape
    L, H, _ = w_hh.shape
    horizon = w_fc.shape[1]

    # out[:, -1:] on a time-major (S, B, H) RNN output reads only batch B-1;
    # batch elements are independent, so drop the dead compute (B -> 1).
    src_last = src[:, B - 1, :]                             # (S, I)

    # Fuse per-layer biases once (b_ih_l + b_hh_l), keep f32.
    b_fused = jnp.concatenate([(b_ih0 + b_hh[0])[None], b_ih + b_hh[1:]],
                              axis=0)                       # (L, 1, H)
    # bf16 MXU operands (weights); accumulation stays f32 in-kernel.
    w_hh0_bf16 = w_hh[0].astype(jnp.bfloat16)               # (H, H)
    w_cat_bf16 = jnp.concatenate([w_ih, w_hh[1:]],
                                 axis=1).astype(jnp.bfloat16)  # (L-1, 2H, H)
    w_fc_row = w_fc.T                                       # (horizon, H) f32

    out2d = pl.pallas_call(
        rnn_kernel,
        out_shape=jax.ShapeDtypeStruct((S, horizon), jnp.float32),
        grid_spec=pltpu.PrefetchScalarGridSpec(
            num_scalar_prefetch=0,
            grid=(1,),
            in_specs=[
                _full((S, I)),
                _full((I, H)),
                _full((H, H)),
                _full((L - 1, 2 * H, H)),
                _full((L, 1, H)),
                _full((horizon, H)),
                _full((1, horizon)),
            ],
            out_specs=_full((S, horizon)),
            scratch_shapes=[
                pltpu.VMEM((S, H), jnp.float32),   # layer-0 pre-activations
                pltpu.VMEM((S, H), jnp.float32),   # top-layer hidden sequence
            ],
        ),
        compiler_params=pltpu.CompilerParams(
            dimension_semantics=("arbitrary",)),
    )(src_last, w_ih0, w_hh0_bf16, w_cat_bf16, b_fused, w_fc_row, b_fc)

    # matches self.fc(out[:, -1:]) output shape: (S, 1, horizon)
    return out2d.reshape(S, 1, horizon)


def init_params(key):
    k = 1.0 / np.sqrt(HIDDEN)
    keys = jax.random.split(key, 8)

    def u(kk, shape):
        return jax.random.uniform(kk, shape, jnp.float32, -k, k)

    w_ih0 = u(keys[0], (INPUT_SIZE, HIDDEN))              # weight_ih_l0^T
    b_ih0 = u(keys[1], (1, HIDDEN))
    w_ih = u(keys[2], (NUM_LAYERS - 1, HIDDEN, HIDDEN))   # weight_ih_l{1..3}^T
    b_ih = u(keys[3], (NUM_LAYERS - 1, 1, HIDDEN))
    w_hh = u(keys[4], (NUM_LAYERS, HIDDEN, HIDDEN))       # weight_hh_l{0..3}^T
    b_hh = u(keys[5], (NUM_LAYERS, 1, HIDDEN))
    w_fc = u(keys[6], (HIDDEN, HORIZON))                  # fc.weight^T
    b_fc = u(keys[7], (1, HORIZON))
    return (w_ih0, b_ih0, w_ih, b_ih, w_hh, b_hh, w_fc, b_fc)


def rnn_reference(src, params):
    """Pure-JAX reference with identical semantics (eval mode, no dropout),
    run over the FULL batch to validate the B->1 kernel optimization."""
    w_ih0, b_ih0, w_ih, b_ih, w_hh, b_hh, w_fc, b_fc = params
    S, B, I = src.shape
    L, H, _ = w_hh.shape
    h0 = jnp.zeros((L, B, H), jnp.float32)

    def step(h, x):
        new_h = []
        inp = x
        for l in range(L):
            if l == 0:
                pre = inp @ w_ih0 + b_ih0
            else:
                pre = inp @ w_ih[l - 1] + b_ih[l - 1]
            pre = pre + h[l] @ w_hh[l] + b_hh[l]
            hl = jnp.tanh(pre)
            new_h.append(hl)
            inp = hl
        return jnp.stack(new_h), inp

    _, outs = jax.lax.scan(step, h0, src)      # (S, B, H)
    y = outs[:, -1, :] @ w_fc + b_fc           # (S, horizon)  <- last BATCH elem
    return y.reshape(S, 1, -1)


if __name__ == "__main__":
    key = jax.random.PRNGKey(0)
    k_src, k_params = jax.random.split(key)
    src = jax.random.normal(k_src, (SEQ, BATCH, INPUT_SIZE), jnp.float32)
    params = init_params(k_params)

    out = rnn_forward(src, params)
    out = jax.block_until_ready(out)

    ref = rnn_reference(src, params)
    # Tolerance loosened slightly vs. the pure-f32 version: MXU operands are
    # now explicitly bf16 (f32 accumulation); tanh-bounded states keep the
    # drift well below 1e-2 over the 4x8 recurrence.
    np.testing.assert_allclose(np.asarray(out), np.asarray(ref),
                               rtol=1e-2, atol=1e-2)
    print("KERNEL_OK")
</pallas_src>

<mosaic_0001>
module attributes {stable_mosaic.version = 11 : i64} {
  func.func @rnn_kernel(%arg0: i32, %arg1: memref<8x1xf32, #tpu.memory_space<vmem>>, %arg2: memref<1x128xf32, #tpu.memory_space<vmem>>, %arg3: memref<128x128xbf16, #tpu.memory_space<vmem>>, %arg4: memref<3x256x128xbf16, #tpu.memory_space<vmem>>, %arg5: memref<4x1x128xf32, #tpu.memory_space<vmem>>, %arg6: memref<1x128xf32, #tpu.memory_space<vmem>>, %arg7: memref<1x1xf32, #tpu.memory_space<vmem>>, %arg8: memref<8x1xf32, #tpu.memory_space<vmem>>, %arg9: memref<8x128xf32, #tpu.memory_space<vmem>>, %arg10: memref<8x128xf32, #tpu.memory_space<vmem>>) attributes {dimension_semantics = [#tpu.dimension_semantics<arbitrary>], iteration_bounds = array<i64: 1>, scalar_prefetch = 0 : i64, scratch_operands = 2 : i64, tpu.core_type = #tpu.core_type<tc>, window_params = [{pipeline_mode = #tpu.pipeline_mode<synchronous>, transform_indices = @transform_0, window_bounds = array<i64: 8, 1>}, {pipeline_mode = #tpu.pipeline_mode<synchronous>, transform_indices = @transform_1, window_bounds = array<i64: 1, 128>}, {pipeline_mode = #tpu.pipeline_mode<synchronous>, transform_indices = @transform_2, window_bounds = array<i64: 128, 128>}, {pipeline_mode = #tpu.pipeline_mode<synchronous>, transform_indices = @transform_3, window_bounds = array<i64: 3, 256, 128>}, {pipeline_mode = #tpu.pipeline_mode<synchronous>, transform_indices = @transform_4, window_bounds = array<i64: 4, 1, 128>}, {pipeline_mode = #tpu.pipeline_mode<synchronous>, transform_indices = @transform_5, window_bounds = array<i64: 1, 128>}, {pipeline_mode = #tpu.pipeline_mode<synchronous>, transform_indices = @transform_6, window_bounds = array<i64: 1, 1>}, {pipeline_mode = #tpu.pipeline_mode<synchronous>, transform_indices = @transform_7, window_bounds = array<i64: 8, 1>}]} {
    %c0 = arith.constant 0 : index
    %c0_0 = arith.constant 0 : index
    %0 = vector.load %arg1[%c0, %c0_0] : memref<8x1xf32, #tpu.memory_space<vmem>>, vector<8x1xf32>
    %cst = arith.constant 0.000000e+00 : f32
    %1 = vector.broadcast %cst : f32 to vector<8x128xf32>
    %c0_1 = arith.constant 0 : index
    %c0_2 = arith.constant 0 : index
    %2 = vector.load %arg2[%c0_1, %c0_2] : memref<1x128xf32, #tpu.memory_space<vmem>>, vector<1x128xf32>
    %3 = vector.broadcast %0 : vector<8x1xf32> to vector<8x128xf32>
    %4 = vector.broadcast %2 : vector<1x128xf32> to vector<8x128xf32>
    %5 = arith.mulf %3, %4 : vector<8x128xf32>
    %6 = arith.addf %1, %5 : vector<8x128xf32>
    %c0_3 = arith.constant 0 : index
    %c0_4 = arith.constant 0 : index
    %c0_5 = arith.constant 0 : index
    %7 = vector.load %arg5[%c0_3, %c0_4, %c0_5] : memref<4x1x128xf32, #tpu.memory_space<vmem>>, vector<1x1x128xf32>
    %8 = vector.shape_cast %7 : vector<1x1x128xf32> to vector<1x128xf32>
    %9 = vector.broadcast %8 : vector<1x128xf32> to vector<8x128xf32>
    %10 = arith.addf %6, %9 : vector<8x128xf32>
    %c0_6 = arith.constant 0 : index
    %c0_7 = arith.constant 0 : index
    %11 = vector.load %arg9[%c0_6, %c0_7] : memref<8x128xf32, #tpu.memory_space<vmem>>, vector<8x128xf32>
    tpu.vector_store %arg9[%c0_6, %c0_7], %10 {strides = array<i32>} : memref<8x128xf32, #tpu.memory_space<vmem>>, vector<8x128xf32>,
    %c1 = arith.constant 1 : index
    %c0_8 = arith.constant 0 : index
    %c0_9 = arith.constant 0 : index
    %12 = vector.load %arg5[%c1, %c0_8, %c0_9] : memref<4x1x128xf32, #tpu.memory_space<vmem>>, vector<1x1x128xf32>
    %13 = vector.shape_cast %12 : vector<1x1x128xf32> to vector<1x128xf32>
    %c2 = arith.constant 2 : index
    %c0_10 = arith.constant 0 : index
    %c0_11 = arith.constant 0 : index
    %14 = vector.load %arg5[%c2, %c0_10, %c0_11] : memref<4x1x128xf32, #tpu.memory_space<vmem>>, vector<1x1x128xf32>
    %15 = vector.shape_cast %14 : vector<1x1x128xf32> to vector<1x128xf32>
    %c3 = arith.constant 3 : index
    %c0_12 = arith.constant 0 : index
    %c0_13 = arith.constant 0 : index
    %16 = vector.load %arg5[%c3, %c0_12, %c0_13] : memref<4x1x128xf32, #tpu.memory_space<vmem>>, vector<1x1x128xf32>
    %17 = vector.shape_cast %16 : vector<1x1x128xf32> to vector<1x128xf32>
    %cst_14 = arith.constant 0.000000e+00 : f32
    %18 = vector.broadcast %cst_14 : f32 to vector<1x128xf32>
    %cst_15 = arith.constant 0.000000e+00 : f32
    %19 = vector.broadcast %cst_15 : f32 to vector<1x128xf32>
    %cst_16 = arith.constant 0.000000e+00 : f32
    %20 = vector.broadcast %cst_16 : f32 to vector<1x128xf32>
    %cst_17 = arith.constant 0.000000e+00 : f32
    %21 = vector.broadcast %cst_17 : f32 to vector<1x128xf32>
    %c0_18 = arith.constant 0 : index
    %c0_19 = arith.constant 0 : index
    %22 = vector.load %arg9[%c0_18, %c0_19] : memref<8x128xf32, #tpu.memory_space<vmem>>, vector<1x128xf32>
    %23 = arith.truncf %18 : vector<1x128xf32> to vector<1x128xbf16>
    %c0_20 = arith.constant 0 : index
    %c0_21 = arith.constant 0 : index
    %24 = vector.load %arg3[%c0_20, %c0_21] : memref<128x128xbf16, #tpu.memory_space<vmem>>, vector<128x128xbf16>
    %cst_22 = arith.constant dense<0.000000e+00> : vector<1x128xf32>
    %25 = tpu.matmul %23, %24, %cst_22 {dimension_numbers = #tpu.dot_dimension_numbers<[1], [0], [0], [1], [0, 0, 1, 1], [], []>} : vector<1x128xbf16>, vector<128x128xbf16>, vector<1x128xf32> -> vector<1x128xf32>
    %26 = arith.addf %22, %25 : vector<1x128xf32>
    %27 = math.tanh %26 : vector<1x128xf32>
    %c1_23 = arith.constant 1 : index
    %c0_24 = arith.constant 0 : index
    %28 = vector.load %arg9[%c1_23, %c0_24] : memref<8x128xf32, #tpu.memory_space<vmem>>, vector<1x128xf32>
    %29 = arith.truncf %27 : vector<1x128xf32> to vector<1x128xbf16>
    %c0_25 = arith.constant 0 : index
    %c0_26 = arith.constant 0 : index
    %30 = vector.load %arg3[%c0_25, %c0_26] : memref<128x128xbf16, #tpu.memory_space<vmem>>, vector<128x128xbf16>
    %cst_27 = arith.constant dense<0.000000e+00> : vector<1x128xf32>
    %31 = tpu.matmul %29, %30, %cst_27 {dimension_numbers = #tpu.dot_dimension_numbers<[1], [0], [0], [1], [0, 0, 1, 1], [], []>} : vector<1x128xbf16>, vector<128x128xbf16>, vector<1x128xf32> -> vector<1x128xf32>
    %32 = arith.addf %28, %31 : vector<1x128xf32>
    %33 = math.tanh %32 : vector<1x128xf32>
    %34 = tpu.concatenate %27, %19 in 1 : vector<1x128xf32>, vector<1x128xf32> -> vector<1x256xf32>
    %35 = arith.truncf %34 : vector<1x256xf32> to vector<1x256xbf16>
    %c0_28 = arith.constant 0 : index
    %c0_29 = arith.constant 0 : index
    %c0_30 = arith.constant 0 : index
    %36 = vector.load %arg4[%c0_28, %c0_29, %c0_30] : memref<3x256x128xbf16, #tpu.memory_space<vmem>>, vector<1x256x128xbf16>
    %37 = vector.shape_cast %36 : vector<1x256x128xbf16> to vector<256x128xbf16>
    %cst_31 = arith.constant dense<0.000000e+00> : vector<1x128xf32>
    %38 = tpu.matmul %35, %37, %cst_31 {dimension_numbers = #tpu.dot_dimension_numbers<[1], [0], [0], [1], [0, 0, 1, 1], [], []>} : vector<1x256xbf16>, vector<256x128xbf16>, vector<1x128xf32> -> vector<1x128xf32>
    %39 = arith.addf %13, %38 : vector<1x128xf32>
    %40 = math.tanh %39 : vector<1x128xf32>
    %c2_32 = arith.constant 2 : index
    %c0_33 = arith.constant 0 : index
    %41 = vector.load %arg9[%c2_32, %c0_33] : memref<8x128xf32, #tpu.memory_space<vmem>>, vector<1x128xf32>
    %42 = arith.truncf %33 : vector<1x128xf32> to vector<1x128xbf16>
    %c0_34 = arith.constant 0 : index
    %c0_35 = arith.constant 0 : index
    %43 = vector.load %arg3[%c0_34, %c0_35] : memref<128x128xbf16, #tpu.memory_space<vmem>>, vector<128x128xbf16>
    %cst_36 = arith.constant dense<0.000000e+00> : vector<1x128xf32>
    %44 = tpu.matmul %42, %43, %cst_36 {dimension_numbers = #tpu.dot_dimension_numbers<[1], [0], [0], [1], [0, 0, 1, 1], [], []>} : vector<1x128xbf16>, vector<128x128xbf16>, vector<1x128xf32> -> vector<1x128xf32>
    %45 = arith.addf %41, %44 : vector<1x128xf32>
    %46 = math.tanh %45 : vector<1x128xf32>
    %47 = tpu.concatenate %33, %40 in 1 : vector<1x128xf32>, vector<1x128xf32> -> vector<1x256xf32>
    %48 = arith.truncf %47 : vector<1x256xf32> to vector<1x256xbf16>
    %c0_37 = arith.constant 0 : index
    %c0_38 = arith.constant 0 : index
    %c0_39 = arith.constant 0 : index
    %49 = vector.load %arg4[%c0_37, %c0_38, %c0_39] : memref<3x256x128xbf16, #tpu.memory_space<vmem>>, vector<1x256x128xbf16>
    %50 = vector.shape_cast %49 : vector<1x256x128xbf16> to vector<256x128xbf16>
    %cst_40 = arith.constant dense<0.000000e+00> : vector<1x128xf32>
    %51 = tpu.matmul %48, %50, %cst_40 {dimension_numbers = #tpu.dot_dimension_numbers<[1], [0], [0], [1], [0, 0, 1, 1], [], []>} : vector<1x256xbf16>, vector<256x128xbf16>, vector<1x128xf32> -> vector<1x128xf32>
    %52 = arith.addf %13, %51 : vector<1x128xf32>
    %53 = math.tanh %52 : vector<1x128xf32>
    %54 = tpu.concatenate %40, %20 in 1 : vector<1x128xf32>, vector<1x128xf32> -> vector<1x256xf32>
    %55 = arith.truncf %54 : vector<1x256xf32> to vector<1x256xbf16>
    %c1_41 = arith.constant 1 : index
    %c0_42 = arith.constant 0 : index
    %c0_43 = arith.constant 0 : index
    %56 = vector.load %arg4[%c1_41, %c0_42, %c0_43] : memref<3x256x128xbf16, #tpu.memory_space<vmem>>, vector<1x256x128xbf16>
    %57 = vector.shape_cast %56 : vector<1x256x128xbf16> to vector<256x128xbf16>
    %cst_44 = arith.constant dense<0.000000e+00> : vector<1x128xf32>
    %58 = tpu.matmul %55, %57, %cst_44 {dimension_numbers = #tpu.dot_dimension_numbers<[1], [0], [0], [1], [0, 0, 1, 1], [], []>} : vector<1x256xbf16>, vector<256x128xbf16>, vector<1x128xf32> -> vector<1x128xf32>
    %59 = arith.addf %15, %58 : vector<1x128xf32>
    %60 = math.tanh %59 : vector<1x128xf32>
    %c3_45 = arith.constant 3 : index
    %c0_46 = arith.constant 0 : index
    %61 = vector.load %arg9[%c3_45, %c0_46] : memref<8x128xf32, #tpu.memory_space<vmem>>, vector<1x128xf32>
    %62 = arith.truncf %46 : vector<1x128xf32> to vector<1x128xbf16>
    %c0_47 = arith.constant 0 : index
    %c0_48 = arith.constant 0 : index
    %63 = vector.load %arg3[%c0_47, %c0_48] : memref<128x128xbf16, #tpu.memory_space<vmem>>, vector<128x128xbf16>
    %cst_49 = arith.constant dense<0.000000e+00> : vector<1x128xf32>
    %64 = tpu.matmul %62, %63, %cst_49 {dimension_numbers = #tpu.dot_dimension_numbers<[1], [0], [0], [1], [0, 0, 1, 1], [], []>} : vector<1x128xbf16>, vector<128x128xbf16>, vector<1x128xf32> -> vector<1x128xf32>
    %65 = arith.addf %61, %64 : vector<1x128xf32>
    %66 = math.tanh %65 : vector<1x128xf32>
    %67 = tpu.concatenate %46, %53 in 1 : vector<1x128xf32>, vector<1x128xf32> -> vector<1x256xf32>
    %68 = arith.truncf %67 : vector<1x256xf32> to vector<1x256xbf16>
    %c0_50 = arith.constant 0 : index
    %c0_51 = arith.constant 0 : index
    %c0_52 = arith.constant 0 : index
    %69 = vector.load %arg4[%c0_50, %c0_51, %c0_52] : memref<3x256x128xbf16, #tpu.memory_space<vmem>>, vector<1x256x128xbf16>
    %70 = vector.shape_cast %69 : vector<1x256x128xbf16> to vector<256x128xbf16>
    %cst_53 = arith.constant dense<0.000000e+00> : vector<1x128xf32>
    %71 = tpu.matmul %68, %70, %cst_53 {dimension_numbers = #tpu.dot_dimension_numbers<[1], [0], [0], [1], [0, 0, 1, 1], [], []>} : vector<1x256xbf16>, vector<256x128xbf16>, vector<1x128xf32> -> vector<1x128xf32>
    %72 = arith.addf %13, %71 : vector<1x128xf32>
    %73 = math.tanh %72 : vector<1x128xf32>
    %74 = tpu.concatenate %53, %60 in 1 : vector<1x128xf32>, vector<1x128xf32> -> vector<1x256xf32>
    %75 = arith.truncf %74 : vector<1x256xf32> to vector<1x256xbf16>
    %c1_54 = arith.constant 1 : index
    %c0_55 = arith.constant 0 : index
    %c0_56 = arith.constant 0 : index
    %76 = vector.load %arg4[%c1_54, %c0_55, %c0_56] : memref<3x256x128xbf16, #tpu.memory_space<vmem>>, vector<1x256x128xbf16>
    %77 = vector.shape_cast %76 : vector<1x256x128xbf16> to vector<256x128xbf16>
    %cst_57 = arith.constant dense<0.000000e+00> : vector<1x128xf32>
    %78 = tpu.matmul %75, %77, %cst_57 {dimension_numbers = #tpu.dot_dimension_numbers<[1], [0], [0], [1], [0, 0, 1, 1], [], []>} : vector<1x256xbf16>, vector<256x128xbf16>, vector<1x128xf32> -> vector<1x128xf32>
    %79 = arith.addf %15, %78 : vector<1x128xf32>
    %80 = math.tanh %79 : vector<1x128xf32>
    %81 = tpu.concatenate %60, %21 in 1 : vector<1x128xf32>, vector<1x128xf32> -> vector<1x256xf32>
    %82 = arith.truncf %81 : vector<1x256xf32> to vector<1x256xbf16>
    %c2_58 = arith.constant 2 : index
    %c0_59 = arith.constant 0 : index
    %c0_60 = arith.constant 0 : index
    %83 = vector.load %arg4[%c2_58, %c0_59, %c0_60] : memref<3x256x128xbf16, #tpu.memory_space<vmem>>, vector<1x256x128xbf16>
    %84 = vector.shape_cast %83 : vector<1x256x128xbf16> to vector<256x128xbf16>
    %cst_61 = arith.constant dense<0.000000e+00> : vector<1x128xf32>
    %85 = tpu.matmul %82, %84, %cst_61 {dimension_numbers = #tpu.dot_dimension_numbers<[1], [0], [0], [1], [0, 0, 1, 1], [], []>} : vector<1x256xbf16>, vector<256x128xbf16>, vector<1x128xf32> -> vector<1x128xf32>
    %86 = arith.addf %17, %85 : vector<1x128xf32>
    %87 = math.tanh %86 : vector<1x128xf32>
    %c0_62 = arith.constant 0 : index
    %c0_63 = arith.constant 0 : index
    %88 = vector.load %arg10[%c0_62, %c0_63] : memref<8x128xf32, #tpu.memory_space<vmem>>, vector<1x128xf32>
    tpu.vector_store %arg10[%c0_62, %c0_63], %87 {strides = array<i32>} : memref<8x128xf32, #tpu.memory_space<vmem>>, vector<1x128xf32>,
    %c4 = arith.constant 4 : index
    %c0_64 = arith.constant 0 : index
    %89 = vector.load %arg9[%c4, %c0_64] : memref<8x128xf32, #tpu.memory_space<vmem>>, vector<1x128xf32>
    %90 = arith.truncf %66 : vector<1x128xf32> to vector<1x128xbf16>
    %c0_65 = arith.constant 0 : index
    %c0_66 = arith.constant 0 : index
    %91 = vector.load %arg3[%c0_65, %c0_66] : memref<128x128xbf16, #tpu.memory_space<vmem>>, vector<128x128xbf16>
    %cst_67 = arith.constant dense<0.000000e+00> : vector<1x128xf32>
    %92 = tpu.matmul %90, %91, %cst_67 {dimension_numbers = #tpu.dot_dimension_numbers<[1], [0], [0], [1], [0, 0, 1, 1], [], []>} : vector<1x128xbf16>, vector<128x128xbf16>, vector<1x128xf32> -> vector<1x128xf32>
    %93 = arith.addf %89, %92 : vector<1x128xf32>
    %94 = math.tanh %93 : vector<1x128xf32>
    %95 = tpu.concatenate %66, %73 in 1 : vector<1x128xf32>, vector<1x128xf32> -> vector<1x256xf32>
    %96 = arith.truncf %95 : vector<1x256xf32> to vector<1x256xbf16>
    %c0_68 = arith.constant 0 : index
    %c0_69 = arith.constant 0 : index
    %c0_70 = arith.constant 0 : index
    %97 = vector.load %arg4[%c0_68, %c0_69, %c0_70] : memref<3x256x128xbf16, #tpu.memory_space<vmem>>, vector<1x256x128xbf16>
    %98 = vector.shape_cast %97 : vector<1x256x128xbf16> to vector<256x128xbf16>
    %cst_71 = arith.constant dense<0.000000e+00> : vector<1x128xf32>
    %99 = tpu.matmul %96, %98, %cst_71 {dimension_numbers = #tpu.dot_dimension_numbers<[1], [0], [0], [1], [0, 0, 1, 1], [], []>} : vector<1x256xbf16>, vector<256x128xbf16>, vector<1x128xf32> -> vector<1x128xf32>
    %100 = arith.addf %13, %99 : vector<1x128xf32>
    %101 = math.tanh %100 : vector<1x128xf32>
    %102 = tpu.concatenate %73, %80 in 1 : vector<1x128xf32>, vector<1x128xf32> -> vector<1x256xf32>
    %103 = arith.truncf %102 : vector<1x256xf32> to vector<1x256xbf16>
    %c1_72 = arith.constant 1 : index
    %c0_73 = arith.constant 0 : index
    %c0_74 = arith.constant 0 : index
    %104 = vector.load %arg4[%c1_72, %c0_73, %c0_74] : memref<3x256x128xbf16, #tpu.memory_space<vmem>>, vector<1x256x128xbf16>
    %105 = vector.shape_cast %104 : vector<1x256x128xbf16> to vector<256x128xbf16>
    %cst_75 = arith.constant dense<0.000000e+00> : vector<1x128xf32>
    %106 = tpu.matmul %103, %105, %cst_75 {dimension_numbers = #tpu.dot_dimension_numbers<[1], [0], [0], [1], [0, 0, 1, 1], [], []>} : vector<1x256xbf16>, vector<256x128xbf16>, vector<1x128xf32> -> vector<1x128xf32>
    %107 = arith.addf %15, %106 : vector<1x128xf32>
    %108 = math.tanh %107 : vector<1x128xf32>
    %109 = tpu.concatenate %80, %87 in 1 : vector<1x128xf32>, vector<1x128xf32> -> vector<1x256xf32>
    %110 = arith.truncf %109 : vector<1x256xf32> to vector<1x256xbf16>
    %c2_76 = arith.constant 2 : index
    %c0_77 = arith.constant 0 : index
    %c0_78 = arith.constant 0 : index
    %111 = vector.load %arg4[%c2_76, %c0_77, %c0_78] : memref<3x256x128xbf16, #tpu.memory_space<vmem>>, vector<1x256x128xbf16>
    %112 = vector.shape_cast %111 : vector<1x256x128xbf16> to vector<256x128xbf16>
    %cst_79 = arith.constant dense<0.000000e+00> : vector<1x128xf32>
    %113 = tpu.matmul %110, %112, %cst_79 {dimension_numbers = #tpu.dot_dimension_numbers<[1], [0], [0], [1], [0, 0, 1, 1], [], []>} : vector<1x256xbf16>, vector<256x128xbf16>, vector<1x128xf32> -> vector<1x128xf32>
    %114 = arith.addf %17, %113 : vector<1x128xf32>
    %115 = math.tanh %114 : vector<1x128xf32>
    %c1_80 = arith.constant 1 : index
    %c0_81 = arith.constant 0 : index
    %116 = vector.load %arg10[%c1_80, %c0_81] : memref<8x128xf32, #tpu.memory_space<vmem>>, vector<1x128xf32>
    tpu.vector_store %arg10[%c1_80, %c0_81], %115 {strides = array<i32>} : memref<8x128xf32, #tpu.memory_space<vmem>>, vector<1x128xf32>,
    %c5 = arith.constant 5 : index
    %c0_82 = arith.constant 0 : index
    %117 = vector.load %arg9[%c5, %c0_82] : memref<8x128xf32, #tpu.memory_space<vmem>>, vector<1x128xf32>
    %118 = arith.truncf %94 : vector<1x128xf32> to vector<1x128xbf16>
    %c0_83 = arith.constant 0 : index
    %c0_84 = arith.constant 0 : index
    %119 = vector.load %arg3[%c0_83, %c0_84] : memref<128x128xbf16, #tpu.memory_space<vmem>>, vector<128x128xbf16>
    %cst_85 = arith.constant dense<0.000000e+00> : vector<1x128xf32>
    %120 = tpu.matmul %118, %119, %cst_85 {dimension_numbers = #tpu.dot_dimension_numbers<[1], [0], [0], [1], [0, 0, 1, 1], [], []>} : vector<1x128xbf16>, vector<128x128xbf16>, vector<1x128xf32> -> vector<1x128xf32>
    %121 = arith.addf %117, %120 : vector<1x128xf32>
    %122 = math.tanh %121 : vector<1x128xf32>
    %123 = tpu.concatenate %94, %101 in 1 : vector<1x128xf32>, vector<1x128xf32> -> vector<1x256xf32>
    %124 = arith.truncf %123 : vector<1x256xf32> to vector<1x256xbf16>
    %c0_86 = arith.constant 0 : index
    %c0_87 = arith.constant 0 : index
    %c0_88 = arith.constant 0 : index
    %125 = vector.load %arg4[%c0_86, %c0_87, %c0_88] : memref<3x256x128xbf16, #tpu.memory_space<vmem>>, vector<1x256x128xbf16>
    %126 = vector.shape_cast %125 : vector<1x256x128xbf16> to vector<256x128xbf16>
    %cst_89 = arith.constant dense<0.000000e+00> : vector<1x128xf32>
    %127 = tpu.matmul %124, %126, %cst_89 {dimension_numbers = #tpu.dot_dimension_numbers<[1], [0], [0], [1], [0, 0, 1, 1], [], []>} : vector<1x256xbf16>, vector<256x128xbf16>, vector<1x128xf32> -> vector<1x128xf32>
    %128 = arith.addf %13, %127 : vector<1x128xf32>
    %129 = math.tanh %128 : vector<1x128xf32>
    %130 = tpu.concatenate %101, %108 in 1 : vector<1x128xf32>, vector<1x128xf32> -> vector<1x256xf32>
    %131 = arith.truncf %130 : vector<1x256xf32> to vector<1x256xbf16>
    %c1_90 = arith.constant 1 : index
    %c0_91 = arith.constant 0 : index
    %c0_92 = arith.constant 0 : index
    %132 = vector.load %arg4[%c1_90, %c0_91, %c0_92] : memref<3x256x128xbf16, #tpu.memory_space<vmem>>, vector<1x256x128xbf16>
    %133 = vector.shape_cast %132 : vector<1x256x128xbf16> to vector<256x128xbf16>
    %cst_93 = arith.constant dense<0.000000e+00> : vector<1x128xf32>
    %134 = tpu.matmul %131, %133, %cst_93 {dimension_numbers = #tpu.dot_dimension_numbers<[1], [0], [0], [1], [0, 0, 1, 1], [], []>} : vector<1x256xbf16>, vector<256x128xbf16>, vector<1x128xf32> -> vector<1x128xf32>
    %135 = arith.addf %15, %134 : vector<1x128xf32>
    %136 = math.tanh %135 : vector<1x128xf32>
    %137 = tpu.concatenate %108, %115 in 1 : vector<1x128xf32>, vector<1x128xf32> -> vector<1x256xf32>
    %138 = arith.truncf %137 : vector<1x256xf32> to vector<1x256xbf16>
    %c2_94 = arith.constant 2 : index
    %c0_95 = arith.constant 0 : index
    %c0_96 = arith.constant 0 : index
    %139 = vector.load %arg4[%c2_94, %c0_95, %c0_96] : memref<3x256x128xbf16, #tpu.memory_space<vmem>>, vector<1x256x128xbf16>
    %140 = vector.shape_cast %139 : vector<1x256x128xbf16> to vector<256x128xbf16>
    %cst_97 = arith.constant dense<0.000000e+00> : vector<1x128xf32>
    %141 = tpu.matmul %138, %140, %cst_97 {dimension_numbers = #tpu.dot_dimension_numbers<[1], [0], [0], [1], [0, 0, 1, 1], [], []>} : vector<1x256xbf16>, vector<256x128xbf16>, vector<1x128xf32> -> vector<1x128xf32>
    %142 = arith.addf %17, %141 : vector<1x128xf32>
    %143 = math.tanh %142 : vector<1x128xf32>
    %c2_98 = arith.constant 2 : index
    %c0_99 = arith.constant 0 : index
    %144 = vector.load %arg10[%c2_98, %c0_99] : memref<8x128xf32, #tpu.memory_space<vmem>>, vector<1x128xf32>
    tpu.vector_store %arg10[%c2_98, %c0_99], %143 {strides = array<i32>} : memref<8x128xf32, #tpu.memory_space<vmem>>, vector<1x128xf32>,
    %c6 = arith.constant 6 : index
    %c0_100 = arith.constant 0 : index
    %145 = vector.load %arg9[%c6, %c0_100] : memref<8x128xf32, #tpu.memory_space<vmem>>, vector<1x128xf32>
    %146 = arith.truncf %122 : vector<1x128xf32> to vector<1x128xbf16>
    %c0_101 = arith.constant 0 : index
    %c0_102 = arith.constant 0 : index
    %147 = vector.load %arg3[%c0_101, %c0_102] : memref<128x128xbf16, #tpu.memory_space<vmem>>, vector<128x128xbf16>
    %cst_103 = arith.constant dense<0.000000e+00> : vector<1x128xf32>
    %148 = tpu.matmul %146, %147, %cst_103 {dimension_numbers = #tpu.dot_dimension_numbers<[1], [0], [0], [1], [0, 0, 1, 1], [], []>} : vector<1x128xbf16>, vector<128x128xbf16>, vector<1x128xf32> -> vector<1x128xf32>
    %149 = arith.addf %145, %148 : vector<1x128xf32>
    %150 = math.tanh %149 : vector<1x128xf32>
    %151 = tpu.concatenate %122, %129 in 1 : vector<1x128xf32>, vector<1x128xf32> -> vector<1x256xf32>
    %152 = arith.truncf %151 : vector<1x256xf32> to vector<1x256xbf16>
    %c0_104 = arith.constant 0 : index
    %c0_105 = arith.constant 0 : index
    %c0_106 = arith.constant 0 : index
    %153 = vector.load %arg4[%c0_104, %c0_105, %c0_106] : memref<3x256x128xbf16, #tpu.memory_space<vmem>>, vector<1x256x128xbf16>
    %154 = vector.shape_cast %153 : vector<1x256x128xbf16> to vector<256x128xbf16>
    %cst_107 = arith.constant dense<0.000000e+00> : vector<1x128xf32>
    %155 = tpu.matmul %152, %154, %cst_107 {dimension_numbers = #tpu.dot_dimension_numbers<[1], [0], [0], [1], [0, 0, 1, 1], [], []>} : vector<1x256xbf16>, vector<256x128xbf16>, vector<1x128xf32> -> vector<1x128xf32>
    %156 = arith.addf %13, %155 : vector<1x128xf32>
    %157 = math.tanh %156 : vector<1x128xf32>
    %158 = tpu.concatenate %129, %136 in 1 : vector<1x128xf32>, vector<1x128xf32> -> vector<1x256xf32>
    %159 = arith.truncf %158 : vector<1x256xf32> to vector<1x256xbf16>
    %c1_108 = arith.constant 1 : index
    %c0_109 = arith.constant 0 : index
    %c0_110 = arith.constant 0 : index
    %160 = vector.load %arg4[%c1_108, %c0_109, %c0_110] : memref<3x256x128xbf16, #tpu.memory_space<vmem>>, vector<1x256x128xbf16>
    %161 = vector.shape_cast %160 : vector<1x256x128xbf16> to vector<256x128xbf16>
    %cst_111 = arith.constant dense<0.000000e+00> : vector<1x128xf32>
    %162 = tpu.matmul %159, %161, %cst_111 {dimension_numbers = #tpu.dot_dimension_numbers<[1], [0], [0], [1], [0, 0, 1, 1], [], []>} : vector<1x256xbf16>, vector<256x128xbf16>, vector<1x128xf32> -> vector<1x128xf32>
    %163 = arith.addf %15, %162 : vector<1x128xf32>
    %164 = math.tanh %163 : vector<1x128xf32>
    %165 = tpu.concatenate %136, %143 in 1 : vector<1x128xf32>, vector<1x128xf32> -> vector<1x256xf32>
    %166 = arith.truncf %165 : vector<1x256xf32> to vector<1x256xbf16>
    %c2_112 = arith.constant 2 : index
    %c0_113 = arith.constant 0 : index
    %c0_114 = arith.constant 0 : index
    %167 = vector.load %arg4[%c2_112, %c0_113, %c0_114] : memref<3x256x128xbf16, #tpu.memory_space<vmem>>, vector<1x256x128xbf16>
    %168 = vector.shape_cast %167 : vector<1x256x128xbf16> to vector<256x128xbf16>
    %cst_115 = arith.constant dense<0.000000e+00> : vector<1x128xf32>
    %169 = tpu.matmul %166, %168, %cst_115 {dimension_numbers = #tpu.dot_dimension_numbers<[1], [0], [0], [1], [0, 0, 1, 1], [], []>} : vector<1x256xbf16>, vector<256x128xbf16>, vector<1x128xf32> -> vector<1x128xf32>
    %170 = arith.addf %17, %169 : vector<1x128xf32>
    %171 = math.tanh %170 : vector<1x128xf32>
    %c3_116 = arith.constant 3 : index
    %c0_117 = arith.constant 0 : index
    %172 = vector.load %arg10[%c3_116, %c0_117] : memref<8x128xf32, #tpu.memory_space<vmem>>, vector<1x128xf32>
    tpu.vector_store %arg10[%c3_116, %c0_117], %171 {strides = array<i32>} : memref<8x128xf32, #tpu.memory_space<vmem>>, vector<1x128xf32>,
    %c7 = arith.constant 7 : index
    %c0_118 = arith.constant 0 : index
    %173 = vector.load %arg9[%c7, %c0_118] : memref<8x128xf32, #tpu.memory_space<vmem>>, vector<1x128xf32>
    %174 = arith.truncf %150 : vector<1x128xf32> to vector<1x128xbf16>
    %c0_119 = arith.constant 0 : index
    %c0_120 = arith.constant 0 : index
    %175 = vector.load %arg3[%c0_119, %c0_120] : memref<128x128xbf16, #tpu.memory_space<vmem>>, vector<128x128xbf16>
    %cst_121 = arith.constant dense<0.000000e+00> : vector<1x128xf32>
    %176 = tpu.matmul %174, %175, %cst_121 {dimension_numbers = #tpu.dot_dimension_numbers<[1], [0], [0], [1], [0, 0, 1, 1], [], []>} : vector<1x128xbf16>, vector<128x128xbf16>, vector<1x128xf32> -> vector<1x128xf32>
    %177 = arith.addf %173, %176 : vector<1x128xf32>
    %178 = math.tanh %177 : vector<1x128xf32>
    %179 = tpu.concatenate %150, %157 in 1 : vector<1x128xf32>, vector<1x128xf32> -> vector<1x256xf32>
    %180 = arith.truncf %179 : vector<1x256xf32> to vector<1x256xbf16>
    %c0_122 = arith.constant 0 : index
    %c0_123 = arith.constant 0 : index
    %c0_124 = arith.constant 0 : index
    %181 = vector.load %arg4[%c0_122, %c0_123, %c0_124] : memref<3x256x128xbf16, #tpu.memory_space<vmem>>, vector<1x256x128xbf16>
    %182 = vector.shape_cast %181 : vector<1x256x128xbf16> to vector<256x128xbf16>
    %cst_125 = arith.constant dense<0.000000e+00> : vector<1x128xf32>
    %183 = tpu.matmul %180, %182, %cst_125 {dimension_numbers = #tpu.dot_dimension_numbers<[1], [0], [0], [1], [0, 0, 1, 1], [], []>} : vector<1x256xbf16>, vector<256x128xbf16>, vector<1x128xf32> -> vector<1x128xf32>
    %184 = arith.addf %13, %183 : vector<1x128xf32>
    %185 = math.tanh %184 : vector<1x128xf32>
    %186 = tpu.concatenate %157, %164 in 1 : vector<1x128xf32>, vector<1x128xf32> -> vector<1x256xf32>
    %187 = arith.truncf %186 : vector<1x256xf32> to vector<1x256xbf16>
    %c1_126 = arith.constant 1 : index
    %c0_127 = arith.constant 0 : index
    %c0_128 = arith.constant 0 : index
    %188 = vector.load %arg4[%c1_126, %c0_127, %c0_128] : memref<3x256x128xbf16, #tpu.memory_space<vmem>>, vector<1x256x128xbf16>
    %189 = vector.shape_cast %188 : vector<1x256x128xbf16> to vector<256x128xbf16>
    %cst_129 = arith.constant dense<0.000000e+00> : vector<1x128xf32>
    %190 = tpu.matmul %187, %189, %cst_129 {dimension_numbers = #tpu.dot_dimension_numbers<[1], [0], [0], [1], [0, 0, 1, 1], [], []>} : vector<1x256xbf16>, vector<256x128xbf16>, vector<1x128xf32> -> vector<1x128xf32>
    %191 = arith.addf %15, %190 : vector<1x128xf32>
    %192 = math.tanh %191 : vector<1x128xf32>
    %193 = tpu.concatenate %164, %171 in 1 : vector<1x128xf32>, vector<1x128xf32> -> vector<1x256xf32>
    %194 = arith.truncf %193 : vector<1x256xf32> to vector<1x256xbf16>
    %c2_130 = arith.constant 2 : index
    %c0_131 = arith.constant 0 : index
    %c0_132 = arith.constant 0 : index
    %195 = vector.load %arg4[%c2_130, %c0_131, %c0_132] : memref<3x256x128xbf16, #tpu.memory_space<vmem>>, vector<1x256x128xbf16>
    %196 = vector.shape_cast %195 : vector<1x256x128xbf16> to vector<256x128xbf16>
    %cst_133 = arith.constant dense<0.000000e+00> : vector<1x128xf32>
    %197 = tpu.matmul %194, %196, %cst_133 {dimension_numbers = #tpu.dot_dimension_numbers<[1], [0], [0], [1], [0, 0, 1, 1], [], []>} : vector<1x256xbf16>, vector<256x128xbf16>, vector<1x128xf32> -> vector<1x128xf32>
    %198 = arith.addf %17, %197 : vector<1x128xf32>
    %199 = math.tanh %198 : vector<1x128xf32>
    %c4_134 = arith.constant 4 : index
    %c0_135 = arith.constant 0 : index
    %200 = vector.load %arg10[%c4_134, %c0_135] : memref<8x128xf32, #tpu.memory_space<vmem>>, vector<1x128xf32>
    tpu.vector_store %arg10[%c4_134, %c0_135], %199 {strides = array<i32>} : memref<8x128xf32, #tpu.memory_space<vmem>>, vector<1x128xf32>,
    %201 = tpu.concatenate %178, %185 in 1 : vector<1x128xf32>, vector<1x128xf32> -> vector<1x256xf32>
    %202 = arith.truncf %201 : vector<1x256xf32> to vector<1x256xbf16>
    %c0_136 = arith.constant 0 : index
    %c0_137 = arith.constant 0 : index
    %c0_138 = arith.constant 0 : index
    %203 = vector.load %arg4[%c0_136, %c0_137, %c0_138] : memref<3x256x128xbf16, #tpu.memory_space<vmem>>, vector<1x256x128xbf16>
    %204 = vector.shape_cast %203 : vector<1x256x128xbf16> to vector<256x128xbf16>
    %cst_139 = arith.constant dense<0.000000e+00> : vector<1x128xf32>
    %205 = tpu.matmul %202, %204, %cst_139 {dimension_numbers = #tpu.dot_dimension_numbers<[1], [0], [0], [1], [0, 0, 1, 1], [], []>} : vector<1x256xbf16>, vector<256x128xbf16>, vector<1x128xf32> -> vector<1x128xf32>
    %206 = arith.addf %13, %205 : vector<1x128xf32>
    %207 = math.tanh %206 : vector<1x128xf32>
    %208 = tpu.concatenate %185, %192 in 1 : vector<1x128xf32>, vector<1x128xf32> -> vector<1x256xf32>
    %209 = arith.truncf %208 : vector<1x256xf32> to vector<1x256xbf16>
    %c1_140 = arith.constant 1 : index
    %c0_141 = arith.constant 0 : index
    %c0_142 = arith.constant 0 : index
    %210 = vector.load %arg4[%c1_140, %c0_141, %c0_142] : memref<3x256x128xbf16, #tpu.memory_space<vmem>>, vector<1x256x128xbf16>
    %211 = vector.shape_cast %210 : vector<1x256x128xbf16> to vector<256x128xbf16>
    %cst_143 = arith.constant dense<0.000000e+00> : vector<1x128xf32>
    %212 = tpu.matmul %209, %211, %cst_143 {dimension_numbers = #tpu.dot_dimension_numbers<[1], [0], [0], [1], [0, 0, 1, 1], [], []>} : vector<1x256xbf16>, vector<256x128xbf16>, vector<1x128xf32> -> vector<1x128xf32>
    %213 = arith.addf %15, %212 : vector<1x128xf32>
    %214 = math.tanh %213 : vector<1x128xf32>
    %215 = tpu.concatenate %192, %199 in 1 : vector<1x128xf32>, vector<1x128xf32> -> vector<1x256xf32>
    %216 = arith.truncf %215 : vector<1x256xf32> to vector<1x256xbf16>
    %c2_144 = arith.constant 2 : index
    %c0_145 = arith.constant 0 : index
    %c0_146 = arith.constant 0 : index
    %217 = vector.load %arg4[%c2_144, %c0_145, %c0_146] : memref<3x256x128xbf16, #tpu.memory_space<vmem>>, vector<1x256x128xbf16>
    %218 = vector.shape_cast %217 : vector<1x256x128xbf16> to vector<256x128xbf16>
    %cst_147 = arith.constant dense<0.000000e+00> : vector<1x128xf32>
    %219 = tpu.matmul %216, %218, %cst_147 {dimension_numbers = #tpu.dot_dimension_numbers<[1], [0], [0], [1], [0, 0, 1, 1], [], []>} : vector<1x256xbf16>, vector<256x128xbf16>, vector<1x128xf32> -> vector<1x128xf32>
    %220 = arith.addf %17, %219 : vector<1x128xf32>
    %221 = math.tanh %220 : vector<1x128xf32>
    %c5_148 = arith.constant 5 : index
    %c0_149 = arith.constant 0 : index
    %222 = vector.load %arg10[%c5_148, %c0_149] : memref<8x128xf32, #tpu.memory_space<vmem>>, vector<1x128xf32>
    tpu.vector_store %arg10[%c5_148, %c0_149], %221 {strides = array<i32>} : memref<8x128xf32, #tpu.memory_space<vmem>>, vector<1x128xf32>,
    %223 = tpu.concatenate %207, %214 in 1 : vector<1x128xf32>, vector<1x128xf32> -> vector<1x256xf32>
    %224 = arith.truncf %223 : vector<1x256xf32> to vector<1x256xbf16>
    %c1_150 = arith.constant 1 : index
    %c0_151 = arith.constant 0 : index
    %c0_152 = arith.constant 0 : index
    %225 = vector.load %arg4[%c1_150, %c0_151, %c0_152] : memref<3x256x128xbf16, #tpu.memory_space<vmem>>, vector<1x256x128xbf16>
    %226 = vector.shape_cast %225 : vector<1x256x128xbf16> to vector<256x128xbf16>
    %cst_153 = arith.constant dense<0.000000e+00> : vector<1x128xf32>
    %227 = tpu.matmul %224, %226, %cst_153 {dimension_numbers = #tpu.dot_dimension_numbers<[1], [0], [0], [1], [0, 0, 1, 1], [], []>} : vector<1x256xbf16>, vector<256x128xbf16>, vector<1x128xf32> -> vector<1x128xf32>
    %228 = arith.addf %15, %227 : vector<1x128xf32>
    %229 = math.tanh %228 : vector<1x128xf32>
    %230 = tpu.concatenate %214, %221 in 1 : vector<1x128xf32>, vector<1x128xf32> -> vector<1x256xf32>
    %231 = arith.truncf %230 : vector<1x256xf32> to vector<1x256xbf16>
    %c2_154 = arith.constant 2 : index
    %c0_155 = arith.constant 0 : index
    %c0_156 = arith.constant 0 : index
    %232 = vector.load %arg4[%c2_154, %c0_155, %c0_156] : memref<3x256x128xbf16, #tpu.memory_space<vmem>>, vector<1x256x128xbf16>
    %233 = vector.shape_cast %232 : vector<1x256x128xbf16> to vector<256x128xbf16>
    %cst_157 = arith.constant dense<0.000000e+00> : vector<1x128xf32>
    %234 = tpu.matmul %231, %233, %cst_157 {dimension_numbers = #tpu.dot_dimension_numbers<[1], [0], [0], [1], [0, 0, 1, 1], [], []>} : vector<1x256xbf16>, vector<256x128xbf16>, vector<1x128xf32> -> vector<1x128xf32>
    %235 = arith.addf %17, %234 : vector<1x128xf32>
    %236 = math.tanh %235 : vector<1x128xf32>
    %c6_158 = arith.constant 6 : index
    %c0_159 = arith.constant 0 : index
    %237 = vector.load %arg10[%c6_158, %c0_159] : memref<8x128xf32, #tpu.memory_space<vmem>>, vector<1x128xf32>
    tpu.vector_store %arg10[%c6_158, %c0_159], %236 {strides = array<i32>} : memref<8x128xf32, #tpu.memory_space<vmem>>, vector<1x128xf32>,
    %238 = tpu.concatenate %229, %236 in 1 : vector<1x128xf32>, vector<1x128xf32> -> vector<1x256xf32>
    %239 = arith.truncf %238 : vector<1x256xf32> to vector<1x256xbf16>
    %c2_160 = arith.constant 2 : index
    %c0_161 = arith.constant 0 : index
    %c0_162 = arith.constant 0 : index
    %240 = vector.load %arg4[%c2_160, %c0_161, %c0_162] : memref<3x256x128xbf16, #tpu.memory_space<vmem>>, vector<1x256x128xbf16>
    %241 = vector.shape_cast %240 : vector<1x256x128xbf16> to vector<256x128xbf16>
    %cst_163 = arith.constant dense<0.000000e+00> : vector<1x128xf32>
    %242 = tpu.matmul %239, %241, %cst_163 {dimension_numbers = #tpu.dot_dimension_numbers<[1], [0], [0], [1], [0, 0, 1, 1], [], []>} : vector<1x256xbf16>, vector<256x128xbf16>, vector<1x128xf32> -> vector<1x128xf32>
    %243 = arith.addf %17, %242 : vector<1x128xf32>
    %244 = math.tanh %243 : vector<1x128xf32>
    %c7_164 = arith.constant 7 : index
    %c0_165 = arith.constant 0 : index
    %245 = vector.load %arg10[%c7_164, %c0_165] : memref<8x128xf32, #tpu.memory_space<vmem>>, vector<1x128xf32>
    tpu.vector_store %arg10[%c7_164, %c0_165], %244 {strides = array<i32>} : memref<8x128xf32, #tpu.memory_space<vmem>>, vector<1x128xf32>,
    %c0_166 = arith.constant 0 : index
    %c0_167 = arith.constant 0 : index
    %246 = vector.load %arg10[%c0_166, %c0_167] : memref<8x128xf32, #tpu.memory_space<vmem>>, vector<8x128xf32>
    %c0_168 = arith.constant 0 : index
    %c0_169 = arith.constant 0 : index
    %247 = vector.load %arg6[%c0_168, %c0_169] : memref<1x128xf32, #tpu.memory_space<vmem>>, vector<1x128xf32>
    %248 = vector.broadcast %247 : vector<1x128xf32> to vector<8x128xf32>
    %249 = arith.mulf %246, %248 : vector<8x128xf32>
    %cst_170 = arith.constant dense<0.000000e+00> : vector<8xf32>
    %250 = vector.multi_reduction <add>, %249, %cst_170 [1] : vector<8x128xf32> to vector<8xf32>
    %251 = vector.shape_cast %250 : vector<8xf32> to vector<8x1xf32>
    %c0_171 = arith.constant 0 : index
    %c0_172 = arith.constant 0 : index
    %252 = vector.load %arg7[%c0_171, %c0_172] : memref<1x1xf32, #tpu.memory_space<vmem>>, vector<1x1xf32>
    %253 = vector.broadcast %252 : vector<1x1xf32> to vector<8x1xf32>
    %254 = arith.addf %251, %253 : vector<8x1xf32>
    %c0_173 = arith.constant 0 : index
    %c0_174 = arith.constant 0 : index
    %255 = vector.load %arg8[%c0_173, %c0_174] : memref<8x1xf32, #tpu.memory_space<vmem>>, vector<8x1xf32>
    tpu.vector_store %arg8[%c0_173, %c0_174], %254 {strides = array<i32>} : memref<8x1xf32, #tpu.memory_space<vmem>>, vector<8x1xf32>,
    return
  }
  func.func @transform_0(%arg0: i32) -> (i32, i32) {
    %c0_i32 = arith.constant 0 : i32
    %c0_i32_0 = arith.constant 0 : i32
    %c0_i32_1 = arith.constant 0 : i32
    return %c0_i32, %c0_i32_0 : i32, i32
  }
  func.func @transform_1(%arg0: i32) -> (i32, i32) {
    %c0_i32 = arith.constant 0 : i32
    %c0_i32_0 = arith.constant 0 : i32
    %c0_i32_1 = arith.constant 0 : i32
    return %c0_i32, %c0_i32_0 : i32, i32
  }
  func.func @transform_2(%arg0: i32) -> (i32, i32) {
    %c0_i32 = arith.constant 0 : i32
    %c0_i32_0 = arith.constant 0 : i32
    %c0_i32_1 = arith.constant 0 : i32
    return %c0_i32, %c0_i32_0 : i32, i32
  }
  func.func @transform_3(%arg0: i32) -> (i32, i32, i32) {
    %c0_i32 = arith.constant 0 : i32
    %c0_i32_0 = arith.constant 0 : i32
    %c0_i32_1 = arith.constant 0 : i32
    %c0_i32_2 = arith.constant 0 : i32
    return %c0_i32, %c0_i32_0, %c0_i32_1 : i32, i32, i32
  }
  func.func @transform_4(%arg0: i32) -> (i32, i32, i32) {
    %c0_i32 = arith.constant 0 : i32
    %c0_i32_0 = arith.constant 0 : i32
    %c0_i32_1 = arith.constant 0 : i32
    %c0_i32_2 = arith.constant 0 : i32
    return %c0_i32, %c0_i32_0, %c0_i32_1 : i32, i32, i32
  }
  func.func @transform_5(%arg0: i32) -> (i32, i32) {
    %c0_i32 = arith.constant 0 : i32
    %c0_i32_0 = arith.constant 0 : i32
    %c0_i32_1 = arith.constant 0 : i32
    return %c0_i32, %c0_i32_0 : i32, i32
  }
  func.func @transform_6(%arg0: i32) -> (i32, i32) {
    %c0_i32 = arith.constant 0 : i32
    %c0_i32_0 = arith.constant 0 : i32
    %c0_i32_1 = arith.constant 0 : i32
    return %c0_i32, %c0_i32_0 : i32, i32
  }
  func.func @transform_7(%arg0: i32) -> (i32, i32) {
    %c0_i32 = arith.constant 0 : i32
    %c0_i32_0 = arith.constant 0 : i32
    %c0_i32_1 = arith.constant 0 : i32
    return %c0_i32, %c0_i32_0 : i32, i32
  }
}

</mosaic_0001>

<bundles_post_ra>
// kernel: tpu_custom_call.1
= control target key start
LH: loop header
LB: loop body
LE: loop exit
PB: predicated region body
PF: predicated region fallthrough
CT: control target
= control target key end

     0   :  { %s6548_s0 = inlined_call_operand.vmem [shape: f32[8,1], index: 0, kind: input, shape index: {}]   ;;  %s6549_s1 = inlined_call_operand.vmem [shape: f32[1,128], index: 1, kind: input, shape index: {}]   ;;  %s6550_s2 = inlined_call_operand.hbm [shape: bf16[128,128], index: 2, kind: input, shape index: {}]   ;;  %s6551_s3 = inlined_call_operand.hbm [shape: bf16[3,256,128], index: 3, kind: input, shape index: {}]   ;;  %s6552_s4 = inlined_call_operand.vmem [shape: f32[4,1,128], index: 4, kind: input, shape index: {}]   ;;  %s6553_s5 = inlined_call_operand.vmem [shape: f32[1,128], index: 5, kind: input, shape index: {}]   ;;  %s6554_s6 = inlined_call_operand.<no memory space> [shape: f32[1,1], index: 6, kind: input, shape index: {}]   ;;  %s6555_s7 = inlined_call_operand.vmem [shape: f32[8,1], index: 7, kind: output, shape index: {}]  }
   0x1   :  { %v12_v0 = vstv %s6554_s6 }
   0x2   :  { %13 = vst [vmem:[#allocation4] sm:$0x1] %v12_v0 }
   0x3   :  { %14 = vsyncpa [#allocation6], 0 }
   0x4   :  { %15 = vsyncpa [#allocation8], 0  ;;  %s6179_s26 = smov [#allocation5]  }
   0x5   :  { %s25_s27 = sshll.u32 %s6179_s26, 4  ;;  %s26_s27 = int_to_ptr.vmem [resolvable:$true] %s25_s27 }
   0x6   :  { %s6143_s28 = scalar_lea.vmem %s26_s27, 1024  ;;  %p6148_p1 = scmp.lt.s32.totalorder %s26_s27, %s26_s27 }
   0x7   :  { %p6144_p0 = scmp.ne.s32.totalorder %s26_s27, %s6143_s28  ;;  %p6149_p2 = scmp.lt.s32.totalorder %s6143_s28, %s6143_s28 }
   0x9   :  { %p6150_p3 = por %p6149_p2, %p6148_p1 }
   0xb   :  { %p6151_p4 = pnand %p6150_p3, %p6144_p0 }
   0xd   :  { %6154 = shalt.err (!%p6151_p4)
}
   0xe   :  { %s6180_s29 = smov 64   ;;  %s6181_s30 = smov 4  }
   0xf   :  { %31 = dma.hbm_to_vmem [thread:$0]  %s6550_s2, 1024, %s26_s27, [#allocation6], %s6180_s29, %s6180_s29, %s6181_s30  }
  0x10   :  { %s6182_s6 = smov [#allocation7]  }
  0x11   :  { %s37_s10 = sshll.u32 %s6182_s6, 4  ;;  %s38_s10 = int_to_ptr.vmem [resolvable:$true] %s37_s10 }
  0x12   :  { %s6163_s11 = scalar_lea.vmem %s38_s10, 6144  ;;  %p6168_p6 = scmp.lt.s32.totalorder %s38_s10, %s38_s10 }
  0x13   :  { %p6164_p5 = scmp.ne.s32.totalorder %s38_s10, %s6163_s11  ;;  %p6169_p7 = scmp.lt.s32.totalorder %s6163_s11, %s6163_s11 }
  0x15   :  { %p6170_p8 = por %p6169_p7, %p6168_p6 }
  0x17   :  { %p6171_p9 = pnand %p6170_p8, %p6164_p5 }
  0x19   :  { %6174 = shalt.err (!%p6171_p9)
}
  0x1a   :  { %43 = dma.hbm_to_vmem [thread:$0]  %s6551_s3, 6144, %s38_s10, [#allocation8], %s6180_s29, %s6180_s29, %s6181_s30  }
  0x1b   :  { %6175 = dma.done.wait [#allocation6], 1024  }
  0x1c   :  { %6176 = vsyncadd [#allocation6], 4294966272 }
  0x1d   :  { %6177 = dma.done.wait [#allocation8], 6144  }
  0x1e   :  { %6178 = vsyncadd [#allocation8], 4294961152  ;;  %v6183_v1 = vmov 0.0   ;;  %vm6184_vm0 = vmmov 0   ;;  %v6185_v2 = vmov 0   ;;  %v5668_v3 = vld [vmem:[#allocation5 + $0x38] sm:$0xff]  }
  0x1f   :  { %5499 = vmatprep.subr.bf16.mxu0 %v6183_v1  ;;  %5515 = vmatprep.mubr.msk.bf16.mxu0 %vm6184_vm0, %v6183_v1  ;;  %v5669_v4 = vld [vmem:[#allocation5 + $0x30] sm:$0xff]   ;;  %v5670_v5 = vld [vmem:[#allocation5 + $0x28] sm:$0xff]   ;;  %v5671_v7 = vld [vmem:[#allocation5 + $0x20] sm:$0xff]   ;;  %v6186_v27 = vmov 0.0|0.0   ;;  %vm4508_vm1 = vcmask 7168  }
  0x20   :  { %5667 = vset.pattern.permute.xlu0 %v6185_v2  ;;  %5519 = vmatprep.subr.bf16.mxu1 %v6183_v1  ;;  %v57_v6 = vld [vmem:[%s6548_s0] sm:$0xff]  ;;  %v5672_v8 = vld [vmem:[#allocation5 + $0x18] sm:$0xff]   ;;  %v5675_v11 = vld [vmem:[#allocation5] sm:$0xff]  }
  0x21   :  { %5535 = vmatprep.mubr.msk.bf16.mxu1 %vm6184_vm0, %v6183_v1  ;;  %5500 = vmatpush3.bf16.msra.mxu0 %v5668_v3  ;;  %v5673_v9 = vld [vmem:[#allocation5 + $0x10] sm:$0xff]   ;;  %v5674_v10 = vld [vmem:[#allocation5 + $0x8] sm:$0xff]   ;;  %v5676_v12 = vld [vmem:[#allocation7 + $0x78] sm:$0xff]  }
  0x22   :  { %5520 = vmatpush3.bf16.msra.mxu1 %v5668_v3  ;;  %5501 = vmatprep.subr.bf16.mxu0 %v6183_v1  ;;  %v5677_v13 = vld [vmem:[#allocation7 + $0x38] sm:$0xff]   ;;  %v5678_v14 = vld [vmem:[#allocation7 + $0x70] sm:$0xff]   ;;  %v5680_v16 = vld [vmem:[#allocation7 + $0x68] sm:$0xff]  }
  0x23   :  { %5521 = vmatprep.subr.bf16.mxu1 %v6183_v1  ;;  %61 = vperm.xlu0 %5667, %v57_v6   ;;  %v5679_v15 = vld [vmem:[#allocation7 + $0x30] sm:$0xff]   ;;  %v5681_v17 = vld [vmem:[#allocation7 + $0x28] sm:$0xff]   ;;  %v5682_v18 = vld [vmem:[#allocation7 + $0x60] sm:$0xff]  }
  0x24   :  { %v5683_v19 = vld [vmem:[#allocation7 + $0x20] sm:$0xff]   ;;  %v5684_v20 = vld [vmem:[#allocation7 + $0x58] sm:$0xff]   ;;  %v5686_v22 = vld [vmem:[#allocation7 + $0x50] sm:$0xff]  }
  0x25   :  { %5502 = vmatpush3.bf16.msra.mxu0 %v5669_v4  ;;  %v5685_v21 = vld [vmem:[#allocation7 + $0x18] sm:$0xff]   ;;  %v5687_v23 = vld [vmem:[#allocation7 + $0x10] sm:$0xff]   ;;  %v5688_v24 = vld [vmem:[#allocation7 + $0x48] sm:$0xff]  }
  0x26   :  { %5522 = vmatpush3.bf16.msra.mxu1 %v5669_v4  ;;  %5503 = vmatprep.subr.bf16.mxu0 %v6183_v1  ;;  %v5689_v25 = vld [vmem:[#allocation7 + $0x8] sm:$0xff]   ;;  %v5690_v26 = vld [vmem:[#allocation7 + $0x40] sm:$0xff]   ;;  %v6270_v42 = vld [vmem:[#allocation5 + $0x38] sm:$0xff]  }
  0x27   :  { %5523 = vmatprep.subr.bf16.mxu1 %v6183_v1  ;;  %v6261_v28 = vld [vmem:[#allocation7] sm:$0xff]   ;;  %v4516_v29 = vld [vmem:[%s6549_s1] ss:$0 sm:$0xff]  ;;  %v6273_v43 = vld [vmem:[#allocation7 + $0x38] sm:$0xff]  }
  0x28   :  { %v4517_v30 = vld [vmem:[%s6552_s4] ss:$0 sm:$0xff]  ;;  %v6277_v44 = vld [vmem:[#allocation7 + $0x70] sm:$0xff]   ;;  %v6299_v50 = vld [vmem:[#allocation7 + $0x60] sm:$0xff]  }
  0x29   :  { %5504 = vmatpush3.bf16.msra.mxu0 %v5670_v5  ;;  %v6282_v45 = vld [vmem:[#allocation5 + $0x30] sm:$0xff]   ;;  %v6289_v47 = vld [vmem:[#allocation7 + $0x68] sm:$0xff]   ;;  %v6302_v51 = vld [vmem:[#allocation5 + $0x20] sm:$0xff]  }
  0x2a   :  { %5524 = vmatpush3.bf16.msra.mxu1 %v5670_v5  ;;  %5505 = vmatprep.subr.bf16.mxu0 %v6183_v1  ;;  %v6285_v46 = vld [vmem:[#allocation7 + $0x30] sm:$0xff]   ;;  %v6292_v48 = vld [vmem:[#allocation5 + $0x28] sm:$0xff]   ;;  %v6305_v52 = vld [vmem:[#allocation7 + $0x20] sm:$0xff]  }
  0x2b   :  { %5525 = vmatprep.subr.bf16.mxu1 %v6183_v1  ;;  %v6295_v49 = vld [vmem:[#allocation7 + $0x28] sm:$0xff]   ;;  %v6309_v53 = vld [vmem:[#allocation7 + $0x58] sm:$0xff]   ;;  %v6319_v56 = vld [vmem:[#allocation7 + $0x50] sm:$0xff]  }
  0x2c   :  { %v6312_v54 = vld [vmem:[#allocation5 + $0x18] sm:$0xff]   ;;  %v6322_v57 = vld [vmem:[#allocation5 + $0x10] sm:$0xff]   ;;  %v6329_v59 = vld [vmem:[#allocation7 + $0x48] sm:$0xff]  }
  0x2d   :  { %5506 = vmatpush3.bf16.msra.mxu0 %v5671_v7  ;;  %v6315_v55 = vld [vmem:[#allocation7 + $0x18] sm:$0xff]   ;;  %v6325_v58 = vld [vmem:[#allocation7 + $0x10] sm:$0xff]   ;;  %v6332_v60 = vld [vmem:[#allocation5 + $0x8] sm:$0xff]  }
  0x2e   :  { %5526 = vmatpush3.bf16.msra.mxu1 %v5671_v7  ;;  %5507 = vmatprep.subr.bf16.mxu0 %v6183_v1  ;;  %v6335_v61 = vld [vmem:[#allocation7 + $0x8] sm:$0xff]   ;;  %v6339_v62 = vld [vmem:[#allocation7 + $0x40] sm:$0xff]   ;;  %v6347_v0 = vld [vmem:[#allocation7 + $0xf8] sm:$0xff]  }
  0x2f   :  { %5527 = vmatprep.subr.bf16.mxu1 %v6183_v1  ;;  %v6342_v63 = vld [vmem:[#allocation5] sm:$0xff]   ;;  %v6353_v7 = vld [vmem:[%s6552_s4 + $0x1] sm:$0x1] }
  0x31   :  { %5508 = vmatpush3.bf16.msra.mxu0 %v5672_v8 }
  0x32   :  { %5528 = vmatpush3.bf16.msra.mxu1 %v5672_v8  ;;  %5509 = vmatprep.subr.bf16.mxu0 %v6183_v1 }
  0x33   :  { %5529 = vmatprep.subr.bf16.mxu1 %v6183_v1 }
  0x35   :  { %5510 = vmatpush3.bf16.msra.mxu0 %v5673_v9 }
  0x36   :  { %5530 = vmatpush3.bf16.msra.mxu1 %v5673_v9  ;;  %5511 = vmatprep.subr.bf16.mxu0 %v6183_v1 }
  0x37   :  { %5531 = vmatprep.subr.bf16.mxu1 %v6183_v1 }
  0x39   :  { %5512 = vmatpush3.bf16.msra.mxu0 %v5674_v10 }
  0x3a   :  { %5532 = vmatpush3.bf16.msra.mxu1 %v5674_v10  ;;  %5513 = vmatprep.subr.bf16.mxu0 %v6183_v1 }
  0x3b   :  { %5533 = vmatprep.subr.bf16.mxu1 %v6183_v1 }
  0x3d   :  { %5514 = vmatpush3.bf16.msra.mxu0 %v5675_v11 }
  0x3e   :  { %5534 = vmatpush3.bf16.msra.mxu1 %v5675_v11  ;;  %4917 = vmatprep.subr.bf16.mxu0 %v5676_v12 }
  0x3f   :  { %5539 = vmatprep.subr.bf16.mxu1 %v6183_v1 }
  0x40   :  { %5516 = vmatmul.mubr.bf16.vlgmr.msra.gmra.mxu0 %v6185_v2 }
  0x41   :  { %4918 = vmatpush3.bf16.msra.mxu0 %v5677_v13  ;;  %399 = vmatprep.mubr.bf16.mxu0 %v6186_v27 }
  0x42   :  { %4919 = vmatprep.subr.bf16.mxu0 %v5678_v14 }
  0x45   :  { %4920 = vmatpush3.bf16.msra.mxu0 %v5679_v15 }
  0x46   :  { %4921 = vmatprep.subr.bf16.mxu0 %v5680_v16  ;;  %v6356_v16 = vld [vmem:[#allocation7 + $0xb8] sm:$0xff]  }
  0x49   :  { %4922 = vmatpush3.bf16.msra.mxu0 %v5681_v17 }
  0x4a   :  { %4923 = vmatprep.subr.bf16.mxu0 %v5682_v18  ;;  %v6358_v18 = vld [vmem:[#allocation7 + $0xf0] sm:$0xff]  }
  0x4d   :  { %4924 = vmatpush3.bf16.msra.mxu0 %v5683_v19 }
  0x4e   :  { %4925 = vmatprep.subr.bf16.mxu0 %v5684_v20  ;;  %v6361_v20 = vld [vmem:[#allocation7 + $0xb0] sm:$0xff]  }
  0x51   :  { %4926 = vmatpush3.bf16.msra.mxu0 %v5685_v21 }
  0x52   :  { %4927 = vmatprep.subr.bf16.mxu0 %v5686_v22  ;;  %v6365_v22 = vld [vmem:[#allocation7 + $0xe8] sm:$0xff]  }
  0x55   :  { %4928 = vmatpush3.bf16.msra.mxu0 %v5687_v23  ;;  %v6368_v23 = vld [vmem:[#allocation7 + $0xa8] sm:$0xff]  }
  0x56   :  { %4929 = vmatprep.subr.bf16.mxu0 %v5688_v24  ;;  %v6371_v24 = vld [vmem:[#allocation7 + $0xe0] sm:$0xff]  }
  0x59   :  { %4930 = vmatpush3.bf16.msra.mxu0 %v5689_v25  ;;  %v6378_v25 = vld [vmem:[#allocation7 + $0xa0] sm:$0xff]  }
  0x5a   :  { %4931 = vmatprep.subr.bf16.mxu0 %v5690_v26  ;;  %v6381_v26 = vld [vmem:[#allocation7 + $0xd8] sm:$0xff]  }
  0x5d   :  { %4932 = vmatpush3.bf16.msra.mxu0 %v6261_v28 }
  0x5e   :  { %4948 = vmatprep.subr.bf16.mxu0 %v5676_v12 }
  0x9e   :  { %v62_v31 = vpop.permute.xlu0 %61 }
  0x9f   :  { %v70_v32 = vmul.f32 %v4516_v29, %v62_v31  ;;  %v6389_v29 = vld [vmem:[#allocation7 + $0xd0] sm:$0xff]   ;;  %v6397_v31 = vld [vmem:[#allocation7 + $0xc8] sm:$0xff]  }
  0xa1   :  { %v79_v33 = vadd.f32 %v4517_v30, %v70_v32  ;;  %v6394_v30 = vld [vmem:[#allocation7 + $0x90] sm:$0xff]   ;;  %v6402_v32 = vld [vmem:[#allocation7 + $0x88] sm:$0xff]  }
  0xa3   :  { %80 = vst [vmem:[#allocation2] sm:$0xff] %v79_v33  ;;  %v6405_v33 = vld [vmem:[#allocation7 + $0xc0] sm:$0xff]  }
  0xaa   :  { %v87_v34 = vld [vmem:[#allocation2] sm:$0x1]  ;;  %v194_v2 = vld [vmem:[#allocation2 + $0x1] sm:$0x1] }
 0x100   :  { %v186_v35 = vpop.f32.mrf.mxu0 }
 0x101   :  { %v192_v36 = vadd.f32 %v186_v35, %v87_v34  ;;  %v6410_v34 = vld [vmem:[#allocation7 + $0x80] sm:$0xff]   ;;  %v6130_v35 = vld [vmem:[#allocation7 + $0x78] sm:$0xff]  }
 0x102   :  { %v5517_v37 = vpop.f32.mrf.mxu0 }
 0x103   :  { %6044 = vtanh.f32 %v192_v36  ;;  %v6131_v36 = vld [vmem:[#allocation7] sm:$0xff]   ;;  %v5708_v37 = vld [vmem:[#allocation7 + $0x178] sm:$0xff]  }
 0x104   :  { %v189_v38 = vpop.f32.mrf.mxu0 }
 0x105   :  { %v409_v38 = vld [vmem:[#allocation2 + $0x2] sm:$0x1] }
 0x106   :  { %v5518_v39 = vpop.f32.mrf.mxu0 }
 0x110   :  { %v6045_v40 = vpop.eup %6044 }
 0x111   :  { %v195_v41 = vpack.c.bf16 %v6045_v40, %v6045_v40 }
 0x113   :  { %5536 = vmatmul.mubr.bf16.vlgmr.msra.gmra.mxu1 %v195_v41  ;;  %400 = vmatmul.mubr.bf16.vlgmr.msra.gmra.mxu0 %v195_v41 }
 0x114   :  { %5540 = vmatpush3.bf16.msra.mxu1 %v6270_v42  ;;  %4949 = vmatpush3.bf16.msra.mxu0 %v6273_v43 }
 0x115   :  { %5541 = vmatprep.subr.bf16.mxu1 %v6183_v1  ;;  %4950 = vmatprep.subr.bf16.mxu0 %v6277_v44 }
 0x116   :  { %5555 = vmatprep.mubr.msk.bf16.mxu1 %vm6184_vm0, %v6183_v1 }
 0x118   :  { %5542 = vmatpush3.bf16.msra.mxu1 %v6282_v45  ;;  %4951 = vmatpush3.bf16.msra.mxu0 %v6285_v46 }
 0x119   :  { %5543 = vmatprep.subr.bf16.mxu1 %v6183_v1  ;;  %4952 = vmatprep.subr.bf16.mxu0 %v6289_v47 }
 0x11c   :  { %5544 = vmatpush3.bf16.msra.mxu1 %v6292_v48  ;;  %4953 = vmatpush3.bf16.msra.mxu0 %v6295_v49 }
 0x11d   :  { %5545 = vmatprep.subr.bf16.mxu1 %v6183_v1  ;;  %4954 = vmatprep.subr.bf16.mxu0 %v6299_v50 }
 0x120   :  { %5546 = vmatpush3.bf16.msra.mxu1 %v6302_v51  ;;  %4955 = vmatpush3.bf16.msra.mxu0 %v6305_v52 }
 0x121   :  { %5547 = vmatprep.subr.bf16.mxu1 %v6183_v1  ;;  %4956 = vmatprep.subr.bf16.mxu0 %v6309_v53 }
 0x124   :  { %5548 = vmatpush3.bf16.msra.mxu1 %v6312_v54  ;;  %4957 = vmatpush3.bf16.msra.mxu0 %v6315_v55 }
 0x125   :  { %5549 = vmatprep.subr.bf16.mxu1 %v6183_v1  ;;  %4958 = vmatprep.subr.bf16.mxu0 %v6319_v56 }
 0x128   :  { %5550 = vmatpush3.bf16.msra.mxu1 %v6322_v57  ;;  %4959 = vmatpush3.bf16.msra.mxu0 %v6325_v58 }
 0x129   :  { %5551 = vmatprep.subr.bf16.mxu1 %v6183_v1  ;;  %4960 = vmatprep.subr.bf16.mxu0 %v6329_v59 }
 0x12c   :  { %5552 = vmatpush3.bf16.msra.mxu1 %v6332_v60  ;;  %4961 = vmatpush3.bf16.msra.mxu0 %v6335_v61 }
 0x12d   :  { %5553 = vmatprep.subr.bf16.mxu1 %v6183_v1  ;;  %4962 = vmatprep.subr.bf16.mxu0 %v6339_v62 }
 0x130   :  { %5554 = vmatpush3.bf16.msra.mxu1 %v6342_v63  ;;  %4963 = vmatpush3.bf16.msra.mxu0 %v6261_v28  ;;  %v6386_v28 = vld [vmem:[#allocation7 + $0x98] sm:$0xff]  }
 0x131   :  { %5559 = vmatprep.subr.bf16.mxu0 %v6183_v1  ;;  %4970 = vmatprep.subr.bf16.mxu1 %v6347_v0 }
 0x1d3   :  { %v230_v3 = vpop.f32.mrf.mxu1  ;;  %v4933_v4 = vpop.f32.mrf.mxu0 }
 0x1d4   :  { %v236_v5 = vadd.f32 %v230_v3, %v194_v2  ;;  %v5715_v3 = vld [vmem:[#allocation7 + $0x120] sm:$0xff]  }
 0x1d5   :  { %v5537_v6 = vpop.f32.mrf.mxu1  ;;  %v4934_v8 = vpop.f32.mrf.mxu0 }
 0x1d6   :  { %6046 = vtanh.f32 %v236_v5  ;;  %v4935_v9 = vadd.f32 %v4934_v8, %v4933_v4  ;;  %v5716_v4 = vld [vmem:[#allocation7 + $0x158] sm:$0xff]   ;;  %v5718_v6 = vld [vmem:[#allocation7 + $0x150] sm:$0xff]  }
 0x1d7   :  { %v233_v10 = vpop.f32.mrf.mxu1  ;;  %v4936_v11 = vpop.f32.mrf.mxu0  ;;  %v5717_v5 = vld [vmem:[#allocation7 + $0x118] sm:$0xff]   ;;  %v5719_v8 = vld [vmem:[#allocation7 + $0x110] sm:$0xff]  }
 0x1d8   :  { %v407_v12 = vadd.f32 %v4935_v9, %v6353_v7  ;;  %v5720_v9 = vld [vmem:[#allocation7 + $0x148] sm:$0xff]   ;;  %v5722_v11 = vld [vmem:[#allocation7 + $0x140] sm:$0xff]  }
 0x1d9   :  { %v5538_v13 = vpop.f32.mrf.mxu1  ;;  %v4937_v14 = vpop.f32.mrf.mxu0  ;;  %v5721_v10 = vld [vmem:[#allocation7 + $0x108] sm:$0xff]  }
 0x1da   :  { %6048 = vtanh.f32 %v407_v12  ;;  %v5724_v14 = vld [vmem:[#allocation5 + $0x38] sm:$0xff]  }
 0x1e3   :  { %v6047_v15 = vpop.eup %6046 }
 0x1e4   :  { %v410_v17 = vpack.c.bf16 %v6047_v15, %v6047_v15  ;;  %v5723_v15 = vld [vmem:[#allocation7 + $0x100] sm:$0xff]  }
 0x1e6   :  { %5556 = vmatmul.mubr.bf16.vlgmr.msra.gmra.mxu1 %v410_v17 }
 0x1e7   :  { %v6049_v19 = vpop.eup %6048  ;;  %4971 = vmatpush3.bf16.msra.mxu1 %v6356_v16  ;;  %657 = vmatprep.mubr.bf16.mxu1 %v6186_v27 }
 0x1e8   :  { %4972 = vmatprep.subr.bf16.mxu1 %v6358_v18  ;;  %v453_v21 = vpack.c.bf16 %v6049_v19, %v6049_v19  ;;  %v5728_v19 = vld [vmem:[#allocation7 + $0x78] sm:$0xff]  }
 0x1ea   :  { %486 = vmatprep.mubr.bf16.mxu0 %v453_v21 }
 0x1eb   :  { %4973 = vmatpush3.bf16.msra.mxu1 %v6361_v20  ;;  %487 = vmatmul.mubr.bf16.vlgmr.msra.gmra.mxu0 %v410_v17  ;;  %v5726_v17 = vld [vmem:[#allocation5 + $0x28] sm:$0xff]  }
 0x1ec   :  { %4974 = vmatprep.subr.bf16.mxu1 %v6365_v22  ;;  %5560 = vmatpush3.bf16.msra.mxu0 %v6270_v42 }
 0x1ed   :  { %5561 = vmatprep.subr.bf16.mxu0 %v6183_v1  ;;  %5575 = vmatprep.mubr.msk.bf16.mxu0 %vm6184_vm0, %v6183_v1 }
 0x1ef   :  { %4975 = vmatpush3.bf16.msra.mxu1 %v6368_v23 }
 0x1f0   :  { %4976 = vmatprep.subr.bf16.mxu1 %v6371_v24  ;;  %5562 = vmatpush3.bf16.msra.mxu0 %v6282_v45 }
 0x1f1   :  { %5563 = vmatprep.subr.bf16.mxu0 %v6183_v1 }
 0x1f3   :  { %4977 = vmatpush3.bf16.msra.mxu1 %v6378_v25 }
 0x1f4   :  { %4978 = vmatprep.subr.bf16.mxu1 %v6381_v26  ;;  %5564 = vmatpush3.bf16.msra.mxu0 %v6292_v48 }
 0x1f5   :  { %5565 = vmatprep.subr.bf16.mxu0 %v6183_v1 }
 0x1f7   :  { %4979 = vmatpush3.bf16.msra.mxu1 %v6386_v28 }
 0x1f8   :  { %4980 = vmatprep.subr.bf16.mxu1 %v6389_v29  ;;  %5566 = vmatpush3.bf16.msra.mxu0 %v6302_v51 }
 0x1f9   :  { %5567 = vmatprep.subr.bf16.mxu0 %v6183_v1 }
 0x1fb   :  { %4981 = vmatpush3.bf16.msra.mxu1 %v6394_v30 }
 0x1fc   :  { %4982 = vmatprep.subr.bf16.mxu1 %v6397_v31  ;;  %5568 = vmatpush3.bf16.msra.mxu0 %v6312_v54  ;;  %v5709_v54 = vld [vmem:[#allocation7 + $0x138] sm:$0xff]  }
 0x1fd   :  { %5569 = vmatprep.subr.bf16.mxu0 %v6183_v1 }
 0x1ff   :  { %4983 = vmatpush3.bf16.msra.mxu1 %v6402_v32 }
 0x200   :  { %4984 = vmatprep.subr.bf16.mxu1 %v6405_v33  ;;  %5570 = vmatpush3.bf16.msra.mxu0 %v6322_v57  ;;  %v5712_v57 = vld [vmem:[#allocation7 + $0x168] sm:$0xff]  }
 0x201   :  { %5571 = vmatprep.subr.bf16.mxu0 %v6183_v1 }
 0x203   :  { %4985 = vmatpush3.bf16.msra.mxu1 %v6410_v34 }
 0x204   :  { %5001 = vmatprep.subr.bf16.mxu1 %v6130_v35  ;;  %5572 = vmatpush3.bf16.msra.mxu0 %v6332_v60  ;;  %v5743_v35 = vld [vmem:[#allocation7 + $0x10] sm:$0xff]  }
 0x205   :  { %5573 = vmatprep.subr.bf16.mxu0 %v6183_v1 }
 0x206   :  { %658 = vmatmul.mubr.bf16.vlgmr.msra.gmra.mxu1 %v453_v21  ;;  %v5730_v21 = vld [vmem:[#allocation5 + $0x18] sm:$0xff]  }
 0x207   :  { %5002 = vmatpush3.bf16.msra.mxu1 %v6273_v43 }
 0x208   :  { %5003 = vmatprep.subr.bf16.mxu1 %v6277_v44  ;;  %5574 = vmatpush3.bf16.msra.mxu0 %v6342_v63  ;;  %v5714_v63 = vld [vmem:[#allocation7 + $0x160] sm:$0xff]  }
 0x209   :  { %5023 = vmatprep.subr.bf16.mxu0 %v6347_v0 }
 0x20b   :  { %5004 = vmatpush3.bf16.msra.mxu1 %v6285_v46 }
 0x20c   :  { %5005 = vmatprep.subr.bf16.mxu1 %v6289_v47 }
 0x20f   :  { %5006 = vmatpush3.bf16.msra.mxu1 %v6295_v49 }
 0x210   :  { %5007 = vmatprep.subr.bf16.mxu1 %v6299_v50 }
 0x213   :  { %5008 = vmatpush3.bf16.msra.mxu1 %v6305_v52 }
 0x214   :  { %5009 = vmatprep.subr.bf16.mxu1 %v6309_v53 }
 0x217   :  { %5010 = vmatpush3.bf16.msra.mxu1 %v6315_v55  ;;  %v5710_v55 = vld [vmem:[#allocation7 + $0x170] sm:$0xff]  }
 0x218   :  { %5011 = vmatprep.subr.bf16.mxu1 %v6319_v56  ;;  %v5711_v56 = vld [vmem:[#allocation7 + $0x130] sm:$0xff]  }
 0x21b   :  { %5012 = vmatpush3.bf16.msra.mxu1 %v6325_v58 }
 0x21c   :  { %5013 = vmatprep.subr.bf16.mxu1 %v6329_v59  ;;  %v6447_v59 = vld [vmem:[%s6552_s4 + $0x2] sm:$0x1] }
 0x21f   :  { %5014 = vmatpush3.bf16.msra.mxu1 %v6335_v61  ;;  %v5713_v61 = vld [vmem:[#allocation7 + $0x128] sm:$0xff]  }
 0x220   :  { %5015 = vmatprep.subr.bf16.mxu1 %v6339_v62 }
 0x223   :  { %5016 = vmatpush3.bf16.msra.mxu1 %v6131_v36  ;;  %v5744_v36 = vld [vmem:[#allocation7 + $0x48] sm:$0xff]  }
 0x224   :  { %5045 = vmatprep.subr.bf16.mxu1 %v5708_v37  ;;  %v5746_v37 = vld [vmem:[#allocation7 + $0xf8] sm:$0xff]  }
 0x2a6   :  { %v445_v39 = vpop.f32.mrf.mxu1 }
 0x2a7   :  { %v451_v40 = vadd.f32 %v445_v39, %v409_v38  ;;  %v5745_v38 = vld [vmem:[#allocation7 + $0x8] sm:$0xff]   ;;  %v5747_v39 = vld [vmem:[#allocation7 + $0x40] sm:$0xff]  }
 0x2a8   :  { %v5557_v41 = vpop.f32.mrf.mxu1 }
 0x2a9   :  { %6050 = vtanh.f32 %v451_v40  ;;  %v5749_v40 = vld [vmem:[#allocation7] sm:$0xff]   ;;  %v5752_v41 = vld [vmem:[#allocation7 + $0x178] sm:$0xff]  }
 0x2aa   :  { %v448_v42 = vpop.f32.mrf.mxu1 }
 0x2ab   :  { %v4964_v43 = vpop.f32.mrf.mxu0  ;;  %v667_v42 = vld [vmem:[#allocation2 + $0x3] sm:$0x1] }
 0x2ac   :  { %v5558_v44 = vpop.f32.mrf.mxu1 }
 0x2ad   :  { %v4965_v45 = vpop.f32.mrf.mxu0 }
 0x2ae   :  { %v4966_v46 = vadd.f32 %v4965_v45, %v4964_v43 }
 0x2af   :  { %v4967_v47 = vpop.f32.mrf.mxu0 }
 0x2b0   :  { %v494_v48 = vadd.f32 %v4966_v46, %v6353_v7 }
 0x2b1   :  { %v4968_v49 = vpop.f32.mrf.mxu0 }
 0x2b2   :  { %6052 = vtanh.f32 %v494_v48 }
 0x2b6   :  { %v6051_v50 = vpop.eup %6050 }
 0x2b7   :  { %v668_v51 = vpack.c.bf16 %v6051_v50, %v6051_v50 }
 0x2b9   :  { %5576 = vmatmul.mubr.bf16.vlgmr.msra.gmra.mxu0 %v668_v51 }
 0x2ba   :  { %5024 = vmatpush3.bf16.msra.mxu0 %v6356_v16  ;;  %v5725_v16 = vld [vmem:[#allocation5 + $0x30] sm:$0xff]  }
 0x2bb   :  { %5025 = vmatprep.subr.bf16.mxu0 %v6358_v18  ;;  %v5727_v18 = vld [vmem:[#allocation5 + $0x20] sm:$0xff]  }
 0x2be   :  { %5026 = vmatpush3.bf16.msra.mxu0 %v6361_v20  ;;  %v5729_v20 = vld [vmem:[#allocation7 + $0x38] sm:$0xff]  }
 0x2bf   :  { %v6053_v52 = vpop.eup %6052  ;;  %5027 = vmatprep.subr.bf16.mxu0 %v6365_v22  ;;  %v5731_v22 = vld [vmem:[#allocation7 + $0x70] sm:$0xff]  }
 0x2c0   :  { %v711_v53 = vpack.c.bf16 %v6053_v52, %v6053_v52 }
 0x2c2   :  { %744 = vmatprep.mubr.bf16.mxu1 %v711_v53  ;;  %5028 = vmatpush3.bf16.msra.mxu0 %v6368_v23  ;;  %v5732_v23 = vld [vmem:[#allocation7 + $0x30] sm:$0xff]  }
 0x2c3   :  { %745 = vmatmul.mubr.bf16.vlgmr.msra.gmra.mxu1 %v668_v51  ;;  %5029 = vmatprep.subr.bf16.mxu0 %v6371_v24  ;;  %v5733_v24 = vld [vmem:[#allocation5 + $0x10] sm:$0xff]  }
 0x2c4   :  { %5046 = vmatpush3.bf16.msra.mxu1 %v5709_v54  ;;  %958 = vmatprep.mubr.bf16.mxu1 %v6186_v27 }
 0x2c5   :  { %5047 = vmatprep.subr.bf16.mxu1 %v5710_v55  ;;  %v5748_v55 = vld [vmem:[#allocation7 + $0xb8] sm:$0xff]  }
 0x2c6   :  { %v4986_v58 = vpop.f32.mrf.mxu1  ;;  %5030 = vmatpush3.bf16.msra.mxu0 %v6378_v25  ;;  %v5734_v25 = vld [vmem:[#allocation7 + $0x68] sm:$0xff]  }
 0x2c7   :  { %5031 = vmatprep.subr.bf16.mxu0 %v6381_v26  ;;  %v5735_v26 = vld [vmem:[#allocation7 + $0x28] sm:$0xff]  }
 0x2c8   :  { %v4987_v60 = vpop.f32.mrf.mxu1  ;;  %5048 = vmatpush3.bf16.msra.mxu1 %v5711_v56 }
 0x2c9   :  { %v4988_v62 = vadd.f32 %v4987_v60, %v4986_v58  ;;  %5049 = vmatprep.subr.bf16.mxu1 %v5712_v57  ;;  %v5750_v57 = vld [vmem:[#allocation7 + $0xf0] sm:$0xff]   ;;  %v5754_v60 = vld [vmem:[#allocation7 + $0xe8] sm:$0xff]  }
 0x2ca   :  { %v4989_v0 = vpop.f32.mrf.mxu1  ;;  %5032 = vmatpush3.bf16.msra.mxu0 %v6386_v28  ;;  %v5736_v28 = vld [vmem:[#allocation5 + $0x8] sm:$0xff]   ;;  %v5751_v58 = vld [vmem:[#allocation7 + $0xb0] sm:$0xff]  }
 0x2cb   :  { %v665_v27 = vadd.f32 %v4988_v62, %v6447_v59  ;;  %5033 = vmatprep.subr.bf16.mxu0 %v6389_v29  ;;  %v5737_v29 = vld [vmem:[#allocation7 + $0x60] sm:$0xff]   ;;  %v5762_v0 = vld [vmem:[#allocation7 + $0xd8] sm:$0xff]  }
 0x2cc   :  { %v4990_v2 = vpop.f32.mrf.mxu1  ;;  %5050 = vmatpush3.bf16.msra.mxu1 %v5713_v61  ;;  %v5755_v61 = vld [vmem:[#allocation7 + $0xa8] sm:$0xff]   ;;  %v5758_v62 = vld [vmem:[#allocation7 + $0xe0] sm:$0xff]  }
 0x2cd   :  { %6054 = vtanh.f32 %v665_v27  ;;  %5051 = vmatprep.subr.bf16.mxu1 %v5714_v63  ;;  %v5759_v63 = vld [vmem:[#allocation7 + $0xa0] sm:$0xff]  }
 0x2ce   :  { %5034 = vmatpush3.bf16.msra.mxu0 %v6394_v30  ;;  %v5738_v30 = vld [vmem:[#allocation7 + $0x20] sm:$0xff]  }
 0x2cf   :  { %5035 = vmatprep.subr.bf16.mxu0 %v6397_v31  ;;  %v5739_v31 = vld [vmem:[#allocation5] sm:$0xff]  }
 0x2d0   :  { %5052 = vmatpush3.bf16.msra.mxu1 %v5715_v3  ;;  %v5753_v3 = vld [vmem:[#allocation7 + $0x138] sm:$0xff]  }
 0x2d1   :  { %5053 = vmatprep.subr.bf16.mxu1 %v5716_v4  ;;  %v5756_v4 = vld [vmem:[#allocation7 + $0x170] sm:$0xff]  }
 0x2d2   :  { %5036 = vmatpush3.bf16.msra.mxu0 %v6402_v32  ;;  %v5740_v32 = vld [vmem:[#allocation7 + $0x58] sm:$0xff]  }
 0x2d3   :  { %5037 = vmatprep.subr.bf16.mxu0 %v6405_v33  ;;  %v5741_v33 = vld [vmem:[#allocation7 + $0x18] sm:$0xff]  }
 0x2d4   :  { %5054 = vmatpush3.bf16.msra.mxu1 %v5717_v5  ;;  %v5763_v5 = vld [vmem:[#allocation7 + $0x98] sm:$0xff]  }
 0x2d5   :  { %5055 = vmatprep.subr.bf16.mxu1 %v5718_v6  ;;  %v5766_v6 = vld [vmem:[#allocation7 + $0xd0] sm:$0xff]  }
 0x2d6   :  { %5038 = vmatpush3.bf16.msra.mxu0 %v6410_v34  ;;  %v5742_v34 = vld [vmem:[#allocation7 + $0x50] sm:$0xff]  }
 0x2d7   :  { %5579 = vmatprep.subr.bf16.mxu0 %v6183_v1 }
 0x2d8   :  { %5056 = vmatpush3.bf16.msra.mxu1 %v5719_v8  ;;  %v5757_v8 = vld [vmem:[#allocation7 + $0x130] sm:$0xff]  }
 0x2d9   :  { %5057 = vmatprep.subr.bf16.mxu1 %v5720_v9  ;;  %v5760_v9 = vld [vmem:[#allocation7 + $0x168] sm:$0xff]  }
 0x2da   :  { %v6055_v12 = vpop.eup %6054 }
 0x2db   :  { %v754_v13 = vpack.c.bf16 %v6055_v12, %v6055_v12  ;;  %v5770_v12 = vld [vmem:[#allocation7 + $0xc8] sm:$0xff]  }
 0x2dc   :  { %5058 = vmatpush3.bf16.msra.mxu1 %v5721_v10  ;;  %v5767_v10 = vld [vmem:[#allocation7 + $0x90] sm:$0xff]  }
 0x2dd   :  { %787 = vmatprep.mubr.bf16.mxu0 %v754_v13  ;;  %5059 = vmatprep.subr.bf16.mxu1 %v5722_v11 }
 0x2de   :  { %788 = vmatmul.mubr.bf16.vlgmr.msra.gmra.mxu0 %v711_v53 }
 0x2df   :  { %5580 = vmatpush3.bf16.msra.mxu0 %v5724_v14  ;;  %5595 = vmatprep.mubr.msk.bf16.mxu0 %vm6184_vm0, %v6183_v1  ;;  %v5761_v14 = vld [vmem:[#allocation7 + $0x128] sm:$0xff]  }
 0x2e0   :  { %5060 = vmatpush3.bf16.msra.mxu1 %v5723_v15  ;;  %5581 = vmatprep.subr.bf16.mxu0 %v6183_v1 }
 0x2e1   :  { %5076 = vmatprep.subr.bf16.mxu1 %v5728_v19  ;;  %v5774_v19 = vld [vmem:[#allocation7 + $0xc0] sm:$0xff]  }
 0x2e3   :  { %959 = vmatmul.mubr.bf16.vlgmr.msra.gmra.mxu1 %v754_v13  ;;  %5582 = vmatpush3.bf16.msra.mxu0 %v5725_v16  ;;  %v5764_v16 = vld [vmem:[#allocation7 + $0x160] sm:$0xff]  }
 0x2e4   :  { %5583 = vmatprep.subr.bf16.mxu0 %v6183_v1  ;;  %5077 = vmatpush3.bf16.msra.mxu1 %v5729_v20 }
 0x2e5   :  { %5078 = vmatprep.subr.bf16.mxu1 %v5731_v22 }
 0x2e7   :  { %5584 = vmatpush3.bf16.msra.mxu0 %v5726_v17  ;;  %v5771_v17 = vld [vmem:[#allocation7 + $0x88] sm:$0xff]  }
 0x2e8   :  { %5585 = vmatprep.subr.bf16.mxu0 %v6183_v1  ;;  %5079 = vmatpush3.bf16.msra.mxu1 %v5732_v23  ;;  %v5765_v23 = vld [vmem:[#allocation7 + $0x120] sm:$0xff]  }
 0x2e9   :  { %5080 = vmatprep.subr.bf16.mxu1 %v5734_v25 }
 0x2eb   :  { %5586 = vmatpush3.bf16.msra.mxu0 %v5727_v18 }
 0x2ec   :  { %5587 = vmatprep.subr.bf16.mxu0 %v6183_v1  ;;  %5081 = vmatpush3.bf16.msra.mxu1 %v5735_v26  ;;  %v5768_v26 = vld [vmem:[#allocation7 + $0x158] sm:$0xff]  }
 0x2ed   :  { %5082 = vmatprep.subr.bf16.mxu1 %v5737_v29 }
 0x2ef   :  { %5588 = vmatpush3.bf16.msra.mxu0 %v5730_v21 }
 0x2f0   :  { %5589 = vmatprep.subr.bf16.mxu0 %v6183_v1  ;;  %5083 = vmatpush3.bf16.msra.mxu1 %v5738_v30 }
 0x2f1   :  { %5084 = vmatprep.subr.bf16.mxu1 %v5740_v32  ;;  %v5769_v32 = vld [vmem:[#allocation7 + $0x118] sm:$0xff]  }
 0x2f3   :  { %5590 = vmatpush3.bf16.msra.mxu0 %v5733_v24  ;;  %v6475_v24 = vld [vmem:[%s6552_s4 + $0x3] sm:$0x1] }
 0x2f4   :  { %5591 = vmatprep.subr.bf16.mxu0 %v6183_v1  ;;  %5085 = vmatpush3.bf16.msra.mxu1 %v5741_v33 }
 0x2f5   :  { %5086 = vmatprep.subr.bf16.mxu1 %v5742_v34  ;;  %v5772_v34 = vld [vmem:[#allocation7 + $0x150] sm:$0xff]  }
 0x2f7   :  { %5592 = vmatpush3.bf16.msra.mxu0 %v5736_v28  ;;  %v5775_v28 = vld [vmem:[#allocation7 + $0x80] sm:$0xff]  }
 0x2f8   :  { %5593 = vmatprep.subr.bf16.mxu0 %v6183_v1  ;;  %5087 = vmatpush3.bf16.msra.mxu1 %v5743_v35  ;;  %v5773_v35 = vld [vmem:[#allocation7 + $0x110] sm:$0xff]  }
 0x2f9   :  { %5088 = vmatprep.subr.bf16.mxu1 %v5744_v36  ;;  %v5776_v36 = vld [vmem:[#allocation7 + $0x148] sm:$0xff]  }
 0x2fb   :  { %5594 = vmatpush3.bf16.msra.mxu0 %v5739_v31 }
 0x2fc   :  { %5098 = vmatprep.subr.bf16.mxu0 %v5746_v37  ;;  %5089 = vmatpush3.bf16.msra.mxu1 %v5745_v38  ;;  %v5777_v37 = vld [vmem:[#allocation7 + $0x108] sm:$0xff]   ;;  %v5778_v38 = vld [vmem:[#allocation7 + $0x140] sm:$0xff]  }
 0x2fd   :  { %5090 = vmatprep.subr.bf16.mxu1 %v5747_v39 }
 0x300   :  { %5091 = vmatpush3.bf16.msra.mxu1 %v5749_v40 }
 0x301   :  { %5120 = vmatprep.subr.bf16.mxu1 %v5752_v41  ;;  %v5780_v41 = vld [vmem:[#allocation5 + $0x38] sm:$0xff]  }
 0x379   :  { %v703_v43 = vpop.f32.mrf.mxu0 }
 0x37a   :  { %v709_v44 = vadd.f32 %v703_v43, %v667_v42  ;;  %v5779_v42 = vld [vmem:[#allocation7 + $0x100] sm:$0xff]  }
 0x37b   :  { %v5577_v45 = vpop.f32.mrf.mxu0 }
 0x37c   :  { %6056 = vtanh.f32 %v709_v44  ;;  %v5781_v44 = vld [vmem:[#allocation5 + $0x30] sm:$0xff]  }
 0x37d   :  { %v706_v46 = vpop.f32.mrf.mxu0 }
 0x37e   :  { %v5782_v46 = vld [vmem:[#allocation5 + $0x28] sm:$0xff]  }
 0x37f   :  { %v5578_v47 = vpop.f32.mrf.mxu0 }
 0x380   :  { %v5783_v47 = vld [vmem:[#allocation5 + $0x20] sm:$0xff]  }
 0x383   :  { %v5017_v48 = vpop.f32.mrf.mxu1 }
 0x385   :  { %v5018_v49 = vpop.f32.mrf.mxu1 }
 0x386   :  { %v5019_v50 = vadd.f32 %v5018_v49, %v5017_v48  ;;  %v5784_v48 = vld [vmem:[#allocation5 + $0x18] sm:$0xff]  }
 0x387   :  { %v5020_v51 = vpop.f32.mrf.mxu1  ;;  %v5785_v49 = vld [vmem:[#allocation7 + $0x78] sm:$0xff]  }
 0x388   :  { %v752_v52 = vadd.f32 %v5019_v50, %v6353_v7  ;;  %v5786_v50 = vld [vmem:[#allocation7 + $0x38] sm:$0xff]   ;;  %v5787_v51 = vld [vmem:[#allocation5 + $0x10] sm:$0xff]  }
 0x389   :  { %v6057_v53 = vpop.eup %6056  ;;  %v5021_v54 = vpop.f32.mrf.mxu1 }
 0x38a   :  { %v970_v56 = vpack.c.bf16 %v6057_v53, %v6057_v53  ;;  %6058 = vtanh.f32 %v752_v52  ;;  %v5788_v52 = vld [vmem:[#allocation7 + $0x70] sm:$0xff]   ;;  %v5790_v54 = vld [vmem:[#allocation5 + $0x8] sm:$0xff]  }
 0x38b   :  { %v5789_v53 = vld [vmem:[#allocation7 + $0x30] sm:$0xff]  }
 0x38c   :  { %5596 = vmatmul.mubr.bf16.vlgmr.msra.gmra.mxu0 %v970_v56 }
 0x38d   :  { %5099 = vmatpush3.bf16.msra.mxu0 %v5748_v55  ;;  %v5791_v55 = vld [vmem:[#allocation7 + $0x68] sm:$0xff]  }
 0x38e   :  { %5100 = vmatprep.subr.bf16.mxu0 %v5750_v57  ;;  %v5793_v57 = vld [vmem:[#allocation5] sm:$0xff]  }
 0x391   :  { %5101 = vmatpush3.bf16.msra.mxu0 %v5751_v58  ;;  %v5794_v58 = vld [vmem:[#allocation7 + $0x60] sm:$0xff]  }
 0x392   :  { %5102 = vmatprep.subr.bf16.mxu0 %v5754_v60  ;;  %v5795_v60 = vld [vmem:[#allocation7 + $0x20] sm:$0xff]  }
 0x395   :  { %5103 = vmatpush3.bf16.msra.mxu0 %v5755_v61  ;;  %v5796_v61 = vld [vmem:[#allocation7 + $0x58] sm:$0xff]  }
 0x396   :  { %5104 = vmatprep.subr.bf16.mxu0 %v5758_v62  ;;  %v5797_v62 = vld [vmem:[#allocation7 + $0x18] sm:$0xff]  }
 0x397   :  { %v6059_v27 = vpop.eup %6058 }
 0x398   :  { %v6468_v2 = vpack.c.bf16 %v6059_v27, %v6059_v27  ;;  %v5799_v27 = vld [vmem:[#allocation7 + $0x10] sm:$0xff]  }
 0x399   :  { %5105 = vmatpush3.bf16.msra.mxu0 %v5759_v63  ;;  %v5798_v63 = vld [vmem:[#allocation7 + $0x50] sm:$0xff]  }
 0x39a   :  { %1238 = vmatprep.mubr.bf16.mxu1 %v6468_v2  ;;  %5106 = vmatprep.subr.bf16.mxu0 %v5762_v0  ;;  %v5802_v0 = vld [vmem:[#allocation7 + $0xf8] sm:$0xff]  }
 0x39b   :  { %1239 = vmatmul.mubr.bf16.vlgmr.msra.gmra.mxu1 %v970_v56  ;;  %v5792_v56 = vld [vmem:[#allocation7 + $0x28] sm:$0xff]  }
 0x39c   :  { %5121 = vmatpush3.bf16.msra.mxu1 %v5753_v3  ;;  %v5801_v3 = vld [vmem:[#allocation7 + $0x8] sm:$0xff]  }
 0x39d   :  { %5122 = vmatprep.subr.bf16.mxu1 %v5756_v4  ;;  %5107 = vmatpush3.bf16.msra.mxu0 %v5763_v5  ;;  %v5803_v4 = vld [vmem:[#allocation7 + $0x40] sm:$0xff]  }
 0x39e   :  { %v5039_v11 = vpop.f32.mrf.mxu0  ;;  %5108 = vmatprep.subr.bf16.mxu0 %v5766_v6  ;;  %v5805_v5 = vld [vmem:[#allocation7] sm:$0xff]   ;;  %v5808_v6 = vld [vmem:[#allocation7 + $0x178] sm:$0xff]  }
 0x3a0   :  { %v5040_v13 = vpop.f32.mrf.mxu0  ;;  %5123 = vmatpush3.bf16.msra.mxu1 %v5757_v8  ;;  %v969_v8 = vld [vmem:[#allocation2 + $0x4] sm:$0x1] }
 0x3a1   :  { %v5041_v15 = vadd.f32 %v5040_v13, %v5039_v11  ;;  %5124 = vmatprep.subr.bf16.mxu1 %v5760_v9  ;;  %5109 = vmatpush3.bf16.msra.mxu0 %v5767_v10 }
 0x3a2   :  { %v5042_v18 = vpop.f32.mrf.mxu0  ;;  %5110 = vmatprep.subr.bf16.mxu0 %v5770_v12 }
 0x3a3   :  { %v795_v20 = vadd.f32 %v5041_v15, %v6447_v59  ;;  %v5061_v21 = vpop.f32.mrf.mxu1 }
 0x3a4   :  { %v5043_v22 = vpop.f32.mrf.mxu0  ;;  %5125 = vmatpush3.bf16.msra.mxu1 %v5761_v14 }
 0x3a5   :  { %6060 = vtanh.f32 %v795_v20  ;;  %v5062_v25 = vpop.f32.mrf.mxu1  ;;  %5126 = vmatprep.subr.bf16.mxu1 %v5764_v16  ;;  %5111 = vmatpush3.bf16.msra.mxu0 %v5771_v17  ;;  %v5804_v16 = vld [vmem:[#allocation7 + $0xb8] sm:$0xff]  }
 0x3a6   :  { %v5063_v29 = vadd.f32 %v5062_v25, %v5061_v21  ;;  %5112 = vmatprep.subr.bf16.mxu0 %v5774_v19  ;;  %v5806_v19 = vld [vmem:[#allocation7 + $0xf0] sm:$0xff]  }
 0x3a7   :  { %v5064_v30 = vpop.f32.mrf.mxu1 }
 0x3a8   :  { %v966_v31 = vadd.f32 %v5063_v29, %v6475_v24  ;;  %5127 = vmatpush3.bf16.msra.mxu1 %v5765_v23  ;;  %v5807_v23 = vld [vmem:[#allocation7 + $0xb0] sm:$0xff]   ;;  %v5814_v29 = vld [vmem:[#allocation7 + $0xe0] sm:$0xff]  }
 0x3a9   :  { %v5065_v33 = vpop.f32.mrf.mxu1  ;;  %5128 = vmatprep.subr.bf16.mxu1 %v5768_v26  ;;  %5113 = vmatpush3.bf16.msra.mxu0 %v5775_v28  ;;  %v5810_v26 = vld [vmem:[#allocation7 + $0xe8] sm:$0xff]   ;;  %v5815_v30 = vld [vmem:[#allocation7 + $0xa0] sm:$0xff]  }
 0x3aa   :  { %6062 = vtanh.f32 %v966_v31  ;;  %5599 = vmatprep.subr.bf16.mxu0 %v6183_v1  ;;  %v5811_v28 = vld [vmem:[#allocation7 + $0xa8] sm:$0xff]   ;;  %v5818_v31 = vld [vmem:[#allocation7 + $0xd8] sm:$0xff]   ;;  %v5822_v33 = vld [vmem:[#allocation7 + $0xd0] sm:$0xff]  }
 0x3ac   :  { %5129 = vmatpush3.bf16.msra.mxu1 %v5769_v32  ;;  %v5819_v32 = vld [vmem:[#allocation7 + $0x98] sm:$0xff]  }
 0x3ad   :  { %5130 = vmatprep.subr.bf16.mxu1 %v5772_v34 }
 0x3b0   :  { %5131 = vmatpush3.bf16.msra.mxu1 %v5773_v35  ;;  %v5809_v35 = vld [vmem:[#allocation7 + $0x138] sm:$0xff]  }
 0x3b1   :  { %5132 = vmatprep.subr.bf16.mxu1 %v5776_v36  ;;  %v5823_v36 = vld [vmem:[#allocation7 + $0x90] sm:$0xff]  }
 0x3b2   :  { %v6061_v39 = vpop.eup %6060 }
 0x3b3   :  { %v1248_v40 = vpack.c.bf16 %v6061_v39, %v6061_v39  ;;  %v5813_v39 = vld [vmem:[#allocation7 + $0x130] sm:$0xff]  }
 0x3b4   :  { %5133 = vmatpush3.bf16.msra.mxu1 %v5777_v37  ;;  %v5812_v37 = vld [vmem:[#allocation7 + $0x170] sm:$0xff]  }
 0x3b5   :  { %1409 = vmatprep.mubr.bf16.mxu0 %v1248_v40  ;;  %5134 = vmatprep.subr.bf16.mxu1 %v5778_v38  ;;  %v5826_v38 = vld [vmem:[#allocation7 + $0xc8] sm:$0xff]  }
 0x3b6   :  { %1410 = vmatmul.mubr.bf16.vlgmr.msra.gmra.mxu0 %v6468_v2  ;;  %v5800_v2 = vld [vmem:[#allocation7 + $0x48] sm:$0xff]  }
 0x3b7   :  { %v6063_v43 = vpop.eup %6062  ;;  %5600 = vmatpush3.bf16.msra.mxu0 %v5780_v41  ;;  %5615 = vmatprep.mubr.msk.bf16.mxu0 %vm6184_vm0, %v6183_v1  ;;  %v5816_v41 = vld [vmem:[#allocation7 + $0x168] sm:$0xff]  }
 0x3b8   :  { %968 = vst [vmem:[#allocation3] sm:$0x1] %v6063_v43  ;;  %5135 = vmatpush3.bf16.msra.mxu1 %v5779_v42  ;;  %v1419_v45 = vpack.c.bf16 %v6063_v43, %v6063_v43  ;;  %5601 = vmatprep.subr.bf16.mxu0 %v6183_v1  ;;  %v5830_v42 = vld [vmem:[#allocation7 + $0xc0] sm:$0xff]  }
 0x3b9   :  { %5151 = vmatprep.subr.bf16.mxu1 %v5785_v49 }
 0x3ba   :  { %1580 = vmatprep.mubr.bf16.mxu1 %v1419_v45  ;;  %v5817_v45 = vld [vmem:[#allocation7 + $0x128] sm:$0xff]  }
 0x3bb   :  { %1581 = vmatmul.mubr.bf16.vlgmr.msra.gmra.mxu1 %v1248_v40  ;;  %5602 = vmatpush3.bf16.msra.mxu0 %v5781_v44  ;;  %v5827_v40 = vld [vmem:[#allocation7 + $0x88] sm:$0xff]  }
 0x3bc   :  { %5603 = vmatprep.subr.bf16.mxu0 %v6183_v1  ;;  %5152 = vmatpush3.bf16.msra.mxu1 %v5786_v50 }
 0x3bd   :  { %5153 = vmatprep.subr.bf16.mxu1 %v5788_v52 }
 0x3bf   :  { %5604 = vmatpush3.bf16.msra.mxu0 %v5782_v46  ;;  %v5831_v46 = vld [vmem:[#allocation7 + $0x80] sm:$0xff]  }
 0x3c0   :  { %5605 = vmatprep.subr.bf16.mxu0 %v6183_v1  ;;  %5154 = vmatpush3.bf16.msra.mxu1 %v5789_v53  ;;  %v5821_v53 = vld [vmem:[#allocation7 + $0x120] sm:$0xff]  }
 0x3c1   :  { %5155 = vmatprep.subr.bf16.mxu1 %v5791_v55  ;;  %v5824_v55 = vld [vmem:[#allocation7 + $0x158] sm:$0xff]  }
 0x3c3   :  { %5606 = vmatpush3.bf16.msra.mxu0 %v5783_v47 }
 0x3c4   :  { %5607 = vmatprep.subr.bf16.mxu0 %v6183_v1  ;;  %5156 = vmatpush3.bf16.msra.mxu1 %v5792_v56 }
 0x3c5   :  { %5157 = vmatprep.subr.bf16.mxu1 %v5794_v58 }
 0x3c7   :  { %5608 = vmatpush3.bf16.msra.mxu0 %v5784_v48  ;;  %v5820_v48 = vld [vmem:[#allocation7 + $0x160] sm:$0xff]  }
 0x3c8   :  { %5609 = vmatprep.subr.bf16.mxu0 %v6183_v1  ;;  %5158 = vmatpush3.bf16.msra.mxu1 %v5795_v60  ;;  %v5825_v60 = vld [vmem:[#allocation7 + $0x118] sm:$0xff]  }
 0x3c9   :  { %5159 = vmatprep.subr.bf16.mxu1 %v5796_v61 }
 0x3cb   :  { %5610 = vmatpush3.bf16.msra.mxu0 %v5787_v51 }
 0x3cc   :  { %5611 = vmatprep.subr.bf16.mxu0 %v6183_v1  ;;  %5160 = vmatpush3.bf16.msra.mxu1 %v5797_v62  ;;  %v5828_v62 = vld [vmem:[#allocation7 + $0x150] sm:$0xff]  }
 0x3cd   :  { %5161 = vmatprep.subr.bf16.mxu1 %v5798_v63  ;;  %v5829_v63 = vld [vmem:[#allocation7 + $0x110] sm:$0xff]  }
 0x3cf   :  { %5612 = vmatpush3.bf16.msra.mxu0 %v5790_v54 }
 0x3d0   :  { %5613 = vmatprep.subr.bf16.mxu0 %v6183_v1  ;;  %5162 = vmatpush3.bf16.msra.mxu1 %v5799_v27  ;;  %v5833_v27 = vld [vmem:[#allocation7 + $0x108] sm:$0xff]  }
 0x3d1   :  { %5163 = vmatprep.subr.bf16.mxu1 %v5800_v2  ;;  %v5834_v2 = vld [vmem:[#allocation7 + $0x140] sm:$0xff]  }
 0x3d3   :  { %5614 = vmatpush3.bf16.msra.mxu0 %v5793_v57 }
 0x3d4   :  { %5173 = vmatprep.subr.bf16.mxu0 %v5802_v0  ;;  %5164 = vmatpush3.bf16.msra.mxu1 %v5801_v3  ;;  %v5832_v0 = vld [vmem:[#allocation7 + $0x148] sm:$0xff]  }
 0x3d5   :  { %5165 = vmatprep.subr.bf16.mxu1 %v5803_v4 }
 0x3d8   :  { %5166 = vmatpush3.bf16.msra.mxu1 %v5805_v5  ;;  %v5836_v5 = vld [vmem:[#allocation5 + $0x38] sm:$0xff]  }
 0x3d9   :  { %5195 = vmatprep.subr.bf16.mxu1 %v5808_v6  ;;  %v5835_v6 = vld [vmem:[#allocation7 + $0x100] sm:$0xff]  }
 0x44c   :  { %v1069_v9 = vpop.f32.mrf.mxu0 }
 0x44d   :  { %v1075_v10 = vadd.f32 %v1069_v9, %v969_v8  ;;  %v5837_v9 = vld [vmem:[#allocation5 + $0x30] sm:$0xff]  }
 0x44e   :  { %v5597_v11 = vpop.f32.mrf.mxu0 }
 0x44f   :  { %6064 = vtanh.f32 %v1075_v10  ;;  %v5838_v11 = vld [vmem:[#allocation5 + $0x28] sm:$0xff]  }
 0x450   :  { %v1072_v12 = vpop.f32.mrf.mxu0 }
 0x451   :  { %v5839_v12 = vld [vmem:[#allocation5 + $0x20] sm:$0xff]  }
 0x452   :  { %v5598_v13 = vpop.f32.mrf.mxu0 }
 0x453   :  { %v5840_v13 = vld [vmem:[#allocation5 + $0x18] sm:$0xff]  }
 0x45b   :  { %v5092_v14 = vpop.f32.mrf.mxu1 }
 0x45c   :  { %v6065_v15 = vpop.eup %6064 }
 0x45d   :  { %v1592_v17 = vpack.c.bf16 %v6065_v15, %v6065_v15  ;;  %v5093_v18 = vpop.f32.mrf.mxu1  ;;  %v5842_v15 = vld [vmem:[#allocation7 + $0x78] sm:$0xff]  }
 0x45e   :  { %v5094_v20 = vadd.f32 %v5093_v18, %v5092_v14  ;;  %v5841_v14 = vld [vmem:[#allocation5 + $0x10] sm:$0xff]  }
 0x45f   :  { %v5095_v21 = vpop.f32.mrf.mxu1  ;;  %5616 = vmatmul.mubr.bf16.vlgmr.msra.gmra.mxu0 %v1592_v17  ;;  %v5845_v18 = vld [vmem:[#allocation7 + $0x70] sm:$0xff]  }
 0x460   :  { %v1246_v22 = vadd.f32 %v5094_v20, %v6353_v7  ;;  %5174 = vmatpush3.bf16.msra.mxu0 %v5804_v16  ;;  %v5843_v16 = vld [vmem:[#allocation5 + $0x8] sm:$0xff]   ;;  %v5847_v20 = vld [vmem:[#allocation7 + $0x30] sm:$0xff]  }
 0x461   :  { %v5096_v25 = vpop.f32.mrf.mxu1  ;;  %5175 = vmatprep.subr.bf16.mxu0 %v5806_v19  ;;  %v5846_v19 = vld [vmem:[#allocation5] sm:$0xff]   ;;  %v5848_v21 = vld [vmem:[#allocation7 + $0x68] sm:$0xff]  }
 0x462   :  { %6066 = vtanh.f32 %v1246_v22  ;;  %v5849_v22 = vld [vmem:[#allocation7 + $0x28] sm:$0xff]   ;;  %v5851_v25 = vld [vmem:[#allocation7 + $0x20] sm:$0xff]  }
 0x464   :  { %5176 = vmatpush3.bf16.msra.mxu0 %v5807_v23  ;;  %v5850_v23 = vld [vmem:[#allocation7 + $0x60] sm:$0xff]  }
 0x465   :  { %5177 = vmatprep.subr.bf16.mxu0 %v5810_v26  ;;  %v5852_v26 = vld [vmem:[#allocation7 + $0x58] sm:$0xff]  }
 0x468   :  { %5178 = vmatpush3.bf16.msra.mxu0 %v5811_v28  ;;  %v5853_v28 = vld [vmem:[#allocation7 + $0x18] sm:$0xff]  }
 0x469   :  { %5179 = vmatprep.subr.bf16.mxu0 %v5814_v29  ;;  %v5854_v29 = vld [vmem:[#allocation7 + $0x50] sm:$0xff]  }
 0x46c   :  { %5180 = vmatpush3.bf16.msra.mxu0 %v5815_v30  ;;  %v5858_v30 = vld [vmem:[#allocation7 + $0xf8] sm:$0xff]  }
 0x46d   :  { %5181 = vmatprep.subr.bf16.mxu0 %v5818_v31  ;;  %v5855_v31 = vld [vmem:[#allocation7 + $0x10] sm:$0xff]  }
 0x46f   :  { %v6067_v34 = vpop.eup %6066 }
 0x470   :  { %v1699_v7 = vpack.c.bf16 %v6067_v34, %v6067_v34  ;;  %5182 = vmatpush3.bf16.msra.mxu0 %v5819_v32  ;;  %v5856_v32 = vld [vmem:[#allocation7 + $0x48] sm:$0xff]   ;;  %v5859_v34 = vld [vmem:[#allocation7 + $0x40] sm:$0xff]  }
 0x471   :  { %5183 = vmatprep.subr.bf16.mxu0 %v5822_v33  ;;  %v5857_v33 = vld [vmem:[#allocation7 + $0x8] sm:$0xff]  }
 0x472   :  { %1860 = vmatprep.mubr.bf16.mxu1 %v1699_v7 }
 0x473   :  { %1861 = vmatmul.mubr.bf16.vlgmr.msra.gmra.mxu1 %v1592_v17  ;;  %v5844_v17 = vld [vmem:[#allocation7 + $0x38] sm:$0xff]  }
 0x474   :  { %5196 = vmatpush3.bf16.msra.mxu1 %v5809_v35  ;;  %5184 = vmatpush3.bf16.msra.mxu0 %v5823_v36  ;;  %v5864_v35 = vld [vmem:[#allocation7 + $0x178] sm:$0xff]   ;;  %v1591_v36 = vld [vmem:[#allocation2 + $0x5] sm:$0x1] }
 0x475   :  { %5197 = vmatprep.subr.bf16.mxu1 %v5812_v37  ;;  %5185 = vmatprep.subr.bf16.mxu0 %v5826_v38 }
 0x476   :  { %v5114_v43 = vpop.f32.mrf.mxu0 }
 0x478   :  { %v5115_v44 = vpop.f32.mrf.mxu0  ;;  %5198 = vmatpush3.bf16.msra.mxu1 %v5813_v39  ;;  %5186 = vmatpush3.bf16.msra.mxu0 %v5827_v40 }
 0x479   :  { %v5116_v47 = vadd.f32 %v5115_v44, %v5114_v43  ;;  %5199 = vmatprep.subr.bf16.mxu1 %v5816_v41  ;;  %5187 = vmatprep.subr.bf16.mxu0 %v5830_v42  ;;  %v5860_v43 = vld [vmem:[#allocation7 + $0xb8] sm:$0xff]  }
 0x47a   :  { %v5117_v49 = vpop.f32.mrf.mxu0 }
 0x47b   :  { %v1417_v50 = vadd.f32 %v5116_v47, %v6447_v59  ;;  %v5136_v51 = vpop.f32.mrf.mxu1  ;;  %v5863_v47 = vld [vmem:[#allocation7 + $0xb0] sm:$0xff]  }
 0x47c   :  { %v5118_v52 = vpop.f32.mrf.mxu0  ;;  %5200 = vmatpush3.bf16.msra.mxu1 %v5817_v45  ;;  %5188 = vmatpush3.bf16.msra.mxu0 %v5831_v46  ;;  %v5862_v45 = vld [vmem:[#allocation7 + $0xf0] sm:$0xff]  }
 0x47d   :  { %6068 = vtanh.f32 %v1417_v50  ;;  %v5137_v54 = vpop.f32.mrf.mxu1  ;;  %5201 = vmatprep.subr.bf16.mxu1 %v5820_v48  ;;  %5619 = vmatprep.subr.bf16.mxu0 %v6183_v1  ;;  %v5866_v48 = vld [vmem:[#allocation7 + $0xe8] sm:$0xff]  }
 0x47e   :  { %v5138_v56 = vadd.f32 %v5137_v54, %v5136_v51  ;;  %v5867_v52 = vld [vmem:[#allocation7 + $0xa8] sm:$0xff]  }
 0x47f   :  { %v5139_v57 = vpop.f32.mrf.mxu1 }
 0x480   :  { %v1588_v58 = vadd.f32 %v5138_v56, %v6475_v24  ;;  %5202 = vmatpush3.bf16.msra.mxu1 %v5821_v53  ;;  %v6505_v53 = vld [vmem:[%s6552_s4 + $0x1] sm:$0x1]  ;;  %v5871_v57 = vld [vmem:[#allocation7 + $0xa0] sm:$0xff]  }
 0x481   :  { %v5140_v61 = vpop.f32.mrf.mxu1  ;;  %5203 = vmatprep.subr.bf16.mxu1 %v5824_v55  ;;  %v5870_v55 = vld [vmem:[#allocation7 + $0xe0] sm:$0xff]  }
 0x482   :  { %6070 = vtanh.f32 %v1588_v58  ;;  %v5874_v58 = vld [vmem:[#allocation7 + $0xd8] sm:$0xff]   ;;  %v5878_v61 = vld [vmem:[#allocation7 + $0xd0] sm:$0xff]  }
 0x484   :  { %5204 = vmatpush3.bf16.msra.mxu1 %v5825_v60  ;;  %v5875_v60 = vld [vmem:[#allocation7 + $0x98] sm:$0xff]  }
 0x485   :  { %5205 = vmatprep.subr.bf16.mxu1 %v5828_v62  ;;  %v5879_v62 = vld [vmem:[#allocation7 + $0x90] sm:$0xff]  }
 0x488   :  { %5206 = vmatpush3.bf16.msra.mxu1 %v5829_v63  ;;  %v5882_v63 = vld [vmem:[#allocation7 + $0xc8] sm:$0xff]  }
 0x489   :  { %5207 = vmatprep.subr.bf16.mxu1 %v5832_v0 }
 0x48a   :  { %v6069_v3 = vpop.eup %6068 }
 0x48b   :  { %v1870_v4 = vpack.c.bf16 %v6069_v3, %v6069_v3  ;;  %v5865_v3 = vld [vmem:[#allocation7 + $0x138] sm:$0xff]  }
 0x48c   :  { %5208 = vmatpush3.bf16.msra.mxu1 %v5833_v27  ;;  %v5883_v27 = vld [vmem:[#allocation7 + $0x88] sm:$0xff]  }
 0x48d   :  { %2031 = vmatprep.mubr.bf16.mxu0 %v1870_v4  ;;  %5209 = vmatprep.subr.bf16.mxu1 %v5834_v2 }
 0x48e   :  { %2032 = vmatmul.mubr.bf16.vlgmr.msra.gmra.mxu0 %v1699_v7  ;;  %v5861_v7 = vld [vmem:[#allocation7] sm:$0xff]  }
 0x48f   :  { %v6071_v8 = vpop.eup %6070  ;;  %5620 = vmatpush3.bf16.msra.mxu0 %v5836_v5  ;;  %5635 = vmatprep.mubr.msk.bf16.mxu0 %vm6184_vm0, %v6183_v1  ;;  %v5868_v5 = vld [vmem:[#allocation7 + $0x170] sm:$0xff]  }
 0x490   :  { %1590 = vst [vmem:[#allocation3 + $0x1] sm:$0x1] %v6071_v8  ;;  %5210 = vmatpush3.bf16.msra.mxu1 %v5835_v6  ;;  %v2041_v10 = vpack.c.bf16 %v6071_v8, %v6071_v8  ;;  %5621 = vmatprep.subr.bf16.mxu0 %v6183_v1  ;;  %v5887_v6 = vld [vmem:[#allocation7 + $0x80] sm:$0xff]   ;;  %v5869_v8 = vld [vmem:[#allocation7 + $0x130] sm:$0xff]  }
 0x491   :  { %5226 = vmatprep.subr.bf16.mxu1 %v5842_v15 }
 0x492   :  { %2202 = vmatprep.mubr.bf16.mxu1 %v2041_v10 }
 0x493   :  { %2203 = vmatmul.mubr.bf16.vlgmr.msra.gmra.mxu1 %v1870_v4  ;;  %5622 = vmatpush3.bf16.msra.mxu0 %v5837_v9  ;;  %v5886_v4 = vld [vmem:[#allocation7 + $0xc0] sm:$0xff]   ;;  %v5872_v9 = vld [vmem:[#allocation7 + $0x168] sm:$0xff]  }
 0x494   :  { %5623 = vmatprep.subr.bf16.mxu0 %v6183_v1  ;;  %5227 = vmatpush3.bf16.msra.mxu1 %v5844_v17 }
 0x495   :  { %5228 = vmatprep.subr.bf16.mxu1 %v5845_v18 }
 0x497   :  { %5624 = vmatpush3.bf16.msra.mxu0 %v5838_v11 }
 0x498   :  { %5625 = vmatprep.subr.bf16.mxu0 %v6183_v1  ;;  %5229 = vmatpush3.bf16.msra.mxu1 %v5847_v20 }
 0x499   :  { %5230 = vmatprep.subr.bf16.mxu1 %v5848_v21  ;;  %v5880_v21 = vld [vmem:[#allocation7 + $0x158] sm:$0xff]  }
 0x49b   :  { %5626 = vmatpush3.bf16.msra.mxu0 %v5839_v12  ;;  %v5873_v12 = vld [vmem:[#allocation7 + $0x128] sm:$0xff]  }
 0x49c   :  { %5627 = vmatprep.subr.bf16.mxu0 %v6183_v1  ;;  %5231 = vmatpush3.bf16.msra.mxu1 %v5849_v22 }
 0x49d   :  { %5232 = vmatprep.subr.bf16.mxu1 %v5850_v23 }
 0x49f   :  { %5628 = vmatpush3.bf16.msra.mxu0 %v5840_v13 }
 0x4a0   :  { %5629 = vmatprep.subr.bf16.mxu0 %v6183_v1  ;;  %5233 = vmatpush3.bf16.msra.mxu1 %v5851_v25 }
 0x4a1   :  { %5234 = vmatprep.subr.bf16.mxu1 %v5852_v26  ;;  %v5881_v26 = vld [vmem:[#allocation7 + $0x118] sm:$0xff]  }
 0x4a3   :  { %5630 = vmatpush3.bf16.msra.mxu0 %v5841_v14  ;;  %v5876_v14 = vld [vmem:[#allocation7 + $0x160] sm:$0xff]  }
 0x4a4   :  { %5631 = vmatprep.subr.bf16.mxu0 %v6183_v1  ;;  %5235 = vmatpush3.bf16.msra.mxu1 %v5853_v28 }
 0x4a5   :  { %5236 = vmatprep.subr.bf16.mxu1 %v5854_v29  ;;  %v5884_v29 = vld [vmem:[#allocation7 + $0x150] sm:$0xff]  }
 0x4a7   :  { %5632 = vmatpush3.bf16.msra.mxu0 %v5843_v16 }
 0x4a8   :  { %5633 = vmatprep.subr.bf16.mxu0 %v6183_v1  ;;  %5237 = vmatpush3.bf16.msra.mxu1 %v5855_v31  ;;  %v5889_v31 = vld [vmem:[#allocation7 + $0x108] sm:$0xff]  }
 0x4a9   :  { %5238 = vmatprep.subr.bf16.mxu1 %v5856_v32  ;;  %v5890_v32 = vld [vmem:[#allocation7 + $0x140] sm:$0xff]  }
 0x4ab   :  { %5634 = vmatpush3.bf16.msra.mxu0 %v5846_v19  ;;  %v5877_v19 = vld [vmem:[#allocation7 + $0x120] sm:$0xff]  }
 0x4ac   :  { %5248 = vmatprep.subr.bf16.mxu0 %v5858_v30  ;;  %5239 = vmatpush3.bf16.msra.mxu1 %v5857_v33  ;;  %v5888_v30 = vld [vmem:[#allocation7 + $0x148] sm:$0xff]  }
 0x4ad   :  { %5240 = vmatprep.subr.bf16.mxu1 %v5859_v34 }
 0x4b0   :  { %5241 = vmatpush3.bf16.msra.mxu1 %v5861_v7  ;;  %v5892_v7 = vld [vmem:[#allocation5 + $0x38] sm:$0xff]  }
 0x4b1   :  { %5270 = vmatprep.subr.bf16.mxu1 %v5864_v35  ;;  %v5891_v35 = vld [vmem:[#allocation7 + $0x100] sm:$0xff]  }
 0x51f   :  { %v1691_v37 = vpop.f32.mrf.mxu0 }
 0x520   :  { %v1697_v38 = vadd.f32 %v1691_v37, %v1591_v36  ;;  %v5893_v37 = vld [vmem:[#allocation5 + $0x30] sm:$0xff]  }
 0x521   :  { %v5617_v39 = vpop.f32.mrf.mxu0 }
 0x522   :  { %6072 = vtanh.f32 %v1697_v38  ;;  %v5894_v39 = vld [vmem:[#allocation5 + $0x28] sm:$0xff]  }
 0x523   :  { %v1694_v40 = vpop.f32.mrf.mxu0 }
 0x524   :  { %v5895_v40 = vld [vmem:[#allocation5 + $0x20] sm:$0xff]  }
 0x525   :  { %v5618_v41 = vpop.f32.mrf.mxu0 }
 0x526   :  { %v5896_v41 = vld [vmem:[#allocation5 + $0x18] sm:$0xff]  }
 0x52f   :  { %v6073_v42 = vpop.eup %6072 }
 0x530   :  { %v2214_v44 = vpack.c.bf16 %v6073_v42, %v6073_v42  ;;  %v5897_v42 = vld [vmem:[#allocation5 + $0x10] sm:$0xff]  }
 0x532   :  { %5636 = vmatmul.mubr.bf16.vlgmr.msra.gmra.mxu0 %v2214_v44 }
 0x533   :  { %v5167_v46 = vpop.f32.mrf.mxu1  ;;  %5249 = vmatpush3.bf16.msra.mxu0 %v5860_v43  ;;  %v5898_v43 = vld [vmem:[#allocation5 + $0x8] sm:$0xff]  }
 0x534   :  { %5250 = vmatprep.subr.bf16.mxu0 %v5862_v45  ;;  %v5900_v45 = vld [vmem:[#allocation7 + $0x78] sm:$0xff]  }
 0x535   :  { %v5168_v49 = vpop.f32.mrf.mxu1 }
 0x536   :  { %v5169_v50 = vadd.f32 %v5168_v49, %v5167_v46  ;;  %v5901_v46 = vld [vmem:[#allocation7 + $0x38] sm:$0xff]   ;;  %v5904_v49 = vld [vmem:[#allocation7 + $0x68] sm:$0xff]  }
 0x537   :  { %v5170_v51 = vpop.f32.mrf.mxu1  ;;  %5251 = vmatpush3.bf16.msra.mxu0 %v5863_v47  ;;  %v5902_v47 = vld [vmem:[#allocation7 + $0x70] sm:$0xff]  }
 0x538   :  { %v1868_v54 = vadd.f32 %v6505_v53, %v5169_v50  ;;  %5252 = vmatprep.subr.bf16.mxu0 %v5866_v48  ;;  %v5903_v48 = vld [vmem:[#allocation7 + $0x30] sm:$0xff]   ;;  %v5905_v50 = vld [vmem:[#allocation7 + $0x28] sm:$0xff]   ;;  %v5906_v51 = vld [vmem:[#allocation7 + $0x60] sm:$0xff]  }
 0x539   :  { %v5171_v56 = vpop.f32.mrf.mxu1 }
 0x53a   :  { %6074 = vtanh.f32 %v1868_v54  ;;  %v5908_v54 = vld [vmem:[#allocation7 + $0x58] sm:$0xff]  }
 0x53b   :  { %5253 = vmatpush3.bf16.msra.mxu0 %v5867_v52  ;;  %v5907_v52 = vld [vmem:[#allocation7 + $0x20] sm:$0xff]   ;;  %v5914_v56 = vld [vmem:[#allocation7 + $0xf8] sm:$0xff]  }
 0x53c   :  { %5254 = vmatprep.subr.bf16.mxu0 %v5870_v55  ;;  %v5910_v55 = vld [vmem:[#allocation7 + $0x50] sm:$0xff]  }
 0x53f   :  { %5255 = vmatpush3.bf16.msra.mxu0 %v5871_v57  ;;  %v5911_v57 = vld [vmem:[#allocation7 + $0x10] sm:$0xff]  }
 0x540   :  { %5256 = vmatprep.subr.bf16.mxu0 %v5874_v58  ;;  %v5912_v58 = vld [vmem:[#allocation7 + $0x48] sm:$0xff]  }
 0x543   :  { %5257 = vmatpush3.bf16.msra.mxu0 %v5875_v60  ;;  %v5913_v60 = vld [vmem:[#allocation7 + $0x8] sm:$0xff]  }
 0x544   :  { %5258 = vmatprep.subr.bf16.mxu0 %v5878_v61  ;;  %v5915_v61 = vld [vmem:[#allocation7 + $0x40] sm:$0xff]  }
 0x547   :  { %v6075_v0 = vpop.eup %6074  ;;  %5259 = vmatpush3.bf16.msra.mxu0 %v5879_v62  ;;  %v5917_v62 = vld [vmem:[#allocation7] sm:$0xff]  }
 0x548   :  { %v2321_v2 = vpack.c.bf16 %v6075_v0, %v6075_v0  ;;  %5260 = vmatprep.subr.bf16.mxu0 %v5882_v63  ;;  %v5920_v63 = vld [vmem:[#allocation7 + $0x178] sm:$0xff]   ;;  %v2213_v0 = vld [vmem:[#allocation2 + $0x6] sm:$0x1] }
 0x54a   :  { %2482 = vmatprep.mubr.bf16.mxu1 %v2321_v2 }
 0x54b   :  { %2483 = vmatmul.mubr.bf16.vlgmr.msra.gmra.mxu1 %v2214_v44  ;;  %5261 = vmatpush3.bf16.msra.mxu0 %v5883_v27  ;;  %v5899_v44 = vld [vmem:[#allocation5] sm:$0xff]  }
 0x54c   :  { %5271 = vmatpush3.bf16.msra.mxu1 %v5865_v3  ;;  %5262 = vmatprep.subr.bf16.mxu0 %v5886_v4 }
 0x54d   :  { %5272 = vmatprep.subr.bf16.mxu1 %v5868_v5 }
 0x54e   :  { %v5189_v10 = vpop.f32.mrf.mxu0 }
 0x54f   :  { %5263 = vmatpush3.bf16.msra.mxu0 %v5887_v6 }
 0x550   :  { %v5190_v11 = vpop.f32.mrf.mxu0  ;;  %5273 = vmatpush3.bf16.msra.mxu1 %v5869_v8  ;;  %5639 = vmatprep.subr.bf16.mxu0 %v6183_v1  ;;  %v5916_v8 = vld [vmem:[#allocation7 + $0xb8] sm:$0xff]  }
 0x551   :  { %v5191_v13 = vadd.f32 %v5190_v11, %v5189_v10  ;;  %5274 = vmatprep.subr.bf16.mxu1 %v5872_v9  ;;  %v5918_v10 = vld [vmem:[#allocation7 + $0xf0] sm:$0xff]  }
 0x552   :  { %v5192_v15 = vpop.f32.mrf.mxu0  ;;  %v5919_v11 = vld [vmem:[#allocation7 + $0xb0] sm:$0xff]  }
 0x553   :  { %v2039_v16 = vadd.f32 %v5191_v13, %v6447_v59  ;;  %v5211_v17 = vpop.f32.mrf.mxu1  ;;  %v5885_v59 = vld [vmem:[#allocation7 + $0x110] sm:$0xff]   ;;  %v5923_v13 = vld [vmem:[#allocation7 + $0xa8] sm:$0xff]   ;;  %v5926_v15 = vld [vmem:[#allocation7 + $0xe0] sm:$0xff]  }
 0x554   :  { %v5193_v18 = vpop.f32.mrf.mxu0  ;;  %5275 = vmatpush3.bf16.msra.mxu1 %v5873_v12  ;;  %v5922_v12 = vld [vmem:[#allocation7 + $0xe8] sm:$0xff]  }
 0x555   :  { %6076 = vtanh.f32 %v2039_v16  ;;  %v5212_v20 = vpop.f32.mrf.mxu1  ;;  %5276 = vmatprep.subr.bf16.mxu1 %v5876_v14  ;;  %v5927_v18 = vld [vmem:[#allocation7 + $0xa0] sm:$0xff]  }
 0x556   :  { %v5213_v22 = vadd.f32 %v5212_v20, %v5211_v17  ;;  %v5930_v20 = vld [vmem:[#allocation7 + $0xd8] sm:$0xff]  }
 0x557   :  { %v5214_v23 = vpop.f32.mrf.mxu1 }
 0x558   :  { %v2210_v25 = vadd.f32 %v5213_v22, %v6475_v24  ;;  %5277 = vmatpush3.bf16.msra.mxu1 %v5877_v19  ;;  %v5931_v23 = vld [vmem:[#allocation7 + $0x98] sm:$0xff]  }
 0x559   :  { %v5215_v28 = vpop.f32.mrf.mxu1  ;;  %5278 = vmatprep.subr.bf16.mxu1 %v5880_v21 }
 0x55a   :  { %6078 = vtanh.f32 %v2210_v25  ;;  %v5934_v25 = vld [vmem:[#allocation7 + $0xd0] sm:$0xff]   ;;  %v5938_v28 = vld [vmem:[#allocation7 + $0xc8] sm:$0xff]  }
 0x55c   :  { %5279 = vmatpush3.bf16.msra.mxu1 %v5881_v26  ;;  %v5935_v26 = vld [vmem:[#allocation7 + $0x90] sm:$0xff]  }
 0x55d   :  { %5280 = vmatprep.subr.bf16.mxu1 %v5884_v29  ;;  %v5939_v29 = vld [vmem:[#allocation7 + $0x88] sm:$0xff]  }
 0x560   :  { %5281 = vmatpush3.bf16.msra.mxu1 %v5885_v59  ;;  %v5942_v59 = vld [vmem:[#allocation7 + $0xc0] sm:$0xff]  }
 0x561   :  { %5282 = vmatprep.subr.bf16.mxu1 %v5888_v30  ;;  %v5943_v30 = vld [vmem:[#allocation7 + $0x80] sm:$0xff]  }
 0x562   :  { %v6077_v33 = vpop.eup %6076 }
 0x563   :  { %v2492_v34 = vpack.c.bf16 %v6077_v33, %v6077_v33  ;;  %v5921_v33 = vld [vmem:[#allocation7 + $0x138] sm:$0xff]  }
 0x564   :  { %5283 = vmatpush3.bf16.msra.mxu1 %v5889_v31 }
 0x565   :  { %2653 = vmatprep.mubr.bf16.mxu0 %v2492_v34  ;;  %5284 = vmatprep.subr.bf16.mxu1 %v5890_v32 }
 0x566   :  { %2654 = vmatmul.mubr.bf16.vlgmr.msra.gmra.mxu0 %v2321_v2 }
 0x567   :  { %v6079_v36 = vpop.eup %6078  ;;  %5640 = vmatpush3.bf16.msra.mxu0 %v5892_v7  ;;  %5655 = vmatprep.mubr.msk.bf16.mxu0 %vm6184_vm0, %v6183_v1  ;;  %v5925_v7 = vld [vmem:[#allocation7 + $0x130] sm:$0xff]  }
 0x568   :  { %2212 = vst [vmem:[#allocation3 + $0x2] sm:$0x1] %v6079_v36  ;;  %5285 = vmatpush3.bf16.msra.mxu1 %v5891_v35  ;;  %v2663_v38 = vpack.c.bf16 %v6079_v36, %v6079_v36  ;;  %5641 = vmatprep.subr.bf16.mxu0 %v6183_v1  ;;  %v5928_v35 = vld [vmem:[#allocation7 + $0x168] sm:$0xff]  }
 0x569   :  { %5301 = vmatprep.subr.bf16.mxu1 %v5900_v45 }
 0x56a   :  { %2824 = vmatprep.mubr.bf16.mxu1 %v2663_v38  ;;  %v5929_v38 = vld [vmem:[#allocation7 + $0x128] sm:$0xff]  }
 0x56b   :  { %2825 = vmatmul.mubr.bf16.vlgmr.msra.gmra.mxu1 %v2492_v34  ;;  %5642 = vmatpush3.bf16.msra.mxu0 %v5893_v37  ;;  %v5924_v34 = vld [vmem:[#allocation7 + $0x170] sm:$0xff]  }
 0x56c   :  { %5643 = vmatprep.subr.bf16.mxu0 %v6183_v1  ;;  %5302 = vmatpush3.bf16.msra.mxu1 %v5901_v46  ;;  %v5933_v46 = vld [vmem:[#allocation7 + $0x120] sm:$0xff]  }
 0x56d   :  { %5303 = vmatprep.subr.bf16.mxu1 %v5902_v47 }
 0x56f   :  { %5644 = vmatpush3.bf16.msra.mxu0 %v5894_v39 }
 0x570   :  { %5645 = vmatprep.subr.bf16.mxu0 %v6183_v1  ;;  %5304 = vmatpush3.bf16.msra.mxu1 %v5903_v48  ;;  %v5936_v48 = vld [vmem:[#allocation7 + $0x158] sm:$0xff]  }
 0x571   :  { %5305 = vmatprep.subr.bf16.mxu1 %v5904_v49 }
 0x573   :  { %5646 = vmatpush3.bf16.msra.mxu0 %v5895_v40  ;;  %v5932_v40 = vld [vmem:[#allocation7 + $0x160] sm:$0xff]  }
 0x574   :  { %5647 = vmatprep.subr.bf16.mxu0 %v6183_v1  ;;  %5306 = vmatpush3.bf16.msra.mxu1 %v5905_v50 }
 0x575   :  { %5307 = vmatprep.subr.bf16.mxu1 %v5906_v51 }
 0x577   :  { %5648 = vmatpush3.bf16.msra.mxu0 %v5896_v41 }
 0x578   :  { %5649 = vmatprep.subr.bf16.mxu0 %v6183_v1  ;;  %5308 = vmatpush3.bf16.msra.mxu1 %v5907_v52  ;;  %v5937_v52 = vld [vmem:[#allocation7 + $0x118] sm:$0xff]  }
 0x579   :  { %5309 = vmatprep.subr.bf16.mxu1 %v5908_v54 }
 0x57b   :  { %5650 = vmatpush3.bf16.msra.mxu0 %v5897_v42  ;;  %v6524_v42 = vld [vmem:[%s6552_s4 + $0x2] sm:$0x1] }
 0x57c   :  { %5651 = vmatprep.subr.bf16.mxu0 %v6183_v1 }
 0x57f   :  { %5652 = vmatpush3.bf16.msra.mxu0 %v5898_v43 }
 0x580   :  { %5653 = vmatprep.subr.bf16.mxu0 %v6183_v1  ;;  %v5909_v1 = vld [vmem:[#allocation7 + $0x18] sm:$0xff]  }
 0x581   :  { %5310 = vmatpush3.bf16.msra.mxu1 %v5909_v1  ;;  %v5940_v1 = vld [vmem:[#allocation7 + $0x150] sm:$0xff]  }
 0x582   :  { %5311 = vmatprep.subr.bf16.mxu1 %v5910_v55  ;;  %v5941_v55 = vld [vmem:[#allocation7 + $0x110] sm:$0xff]  }
 0x583   :  { %5654 = vmatpush3.bf16.msra.mxu0 %v5899_v44 }
 0x584   :  { %5323 = vmatprep.subr.bf16.mxu0 %v5914_v56  ;;  %v5944_v56 = vld [vmem:[#allocation7 + $0x148] sm:$0xff]  }
 0x585   :  { %5312 = vmatpush3.bf16.msra.mxu1 %v5911_v57  ;;  %v5945_v57 = vld [vmem:[#allocation7 + $0x108] sm:$0xff]  }
 0x586   :  { %5313 = vmatprep.subr.bf16.mxu1 %v5912_v58  ;;  %v5946_v58 = vld [vmem:[#allocation7 + $0x140] sm:$0xff]  }
 0x589   :  { %5314 = vmatpush3.bf16.msra.mxu1 %v5913_v60 }
 0x58a   :  { %5315 = vmatprep.subr.bf16.mxu1 %v5915_v61 }
 0x58d   :  { %5316 = vmatpush3.bf16.msra.mxu1 %v5917_v62  ;;  %v5947_v62 = vld [vmem:[#allocation7 + $0x100] sm:$0xff]  }
 0x58e   :  { %5345 = vmatprep.subr.bf16.mxu1 %v5920_v63 }
 0x5f2   :  { %v2313_v27 = vpop.f32.mrf.mxu0 }
 0x5f3   :  { %v2319_v2 = vadd.f32 %v2313_v27, %v2213_v0  ;;  %v5948_v0 = vld [vmem:[#allocation7 + $0x78] sm:$0xff]  }
 0x5f4   :  { %v5637_v3 = vpop.f32.mrf.mxu0  ;;  %v5949_v27 = vld [vmem:[#allocation7 + $0x38] sm:$0xff]  }
 0x5f5   :  { %6080 = vtanh.f32 %v2319_v2  ;;  %v5950_v2 = vld [vmem:[#allocation7 + $0x70] sm:$0xff]  }
 0x5f6   :  { %v2316_v4 = vpop.f32.mrf.mxu0  ;;  %v5951_v3 = vld [vmem:[#allocation7 + $0x30] sm:$0xff]  }
 0x5f7   :  { %v5952_v4 = vld [vmem:[#allocation7 + $0x68] sm:$0xff]  }
 0x5f8   :  { %v5638_v5 = vpop.f32.mrf.mxu0 }
 0x5f9   :  { %v5953_v5 = vld [vmem:[#allocation7 + $0x28] sm:$0xff]  }
 0x602   :  { %v6081_v6 = vpop.eup %6080 }
 0x603   :  { %v2836_v9 = vpack.c.bf16 %v6081_v6, %v6081_v6  ;;  %v5954_v6 = vld [vmem:[#allocation7 + $0x60] sm:$0xff]  }
 0x605   :  { %5656 = vmatmul.mubr.bf16.vlgmr.msra.gmra.mxu0 %v2836_v9 }
 0x606   :  { %5324 = vmatpush3.bf16.msra.mxu0 %v5916_v8  ;;  %v5955_v8 = vld [vmem:[#allocation7 + $0x20] sm:$0xff]  }
 0x607   :  { %5325 = vmatprep.subr.bf16.mxu0 %v5918_v10  ;;  %v5957_v10 = vld [vmem:[#allocation7 + $0x18] sm:$0xff]  }
 0x60a   :  { %5326 = vmatpush3.bf16.msra.mxu0 %v5919_v11  ;;  %v5958_v11 = vld [vmem:[#allocation7 + $0x50] sm:$0xff]  }
 0x60b   :  { %v5242_v14 = vpop.f32.mrf.mxu1  ;;  %5327 = vmatprep.subr.bf16.mxu0 %v5922_v12  ;;  %v5962_v12 = vld [vmem:[#allocation7 + $0xf8] sm:$0xff]  }
 0x60d   :  { %v5243_v16 = vpop.f32.mrf.mxu1 }
 0x60e   :  { %v5244_v17 = vadd.f32 %v5243_v16, %v5242_v14  ;;  %5328 = vmatpush3.bf16.msra.mxu0 %v5923_v13  ;;  %v5959_v13 = vld [vmem:[#allocation7 + $0x10] sm:$0xff]   ;;  %v5964_v14 = vld [vmem:[#allocation7 + $0xb8] sm:$0xff]  }
 0x60f   :  { %v5245_v19 = vpop.f32.mrf.mxu1  ;;  %5329 = vmatprep.subr.bf16.mxu0 %v5926_v15  ;;  %v5960_v15 = vld [vmem:[#allocation7 + $0x48] sm:$0xff]   ;;  %v5966_v16 = vld [vmem:[#allocation7 + $0xf0] sm:$0xff]  }
 0x610   :  { %v2490_v21 = vadd.f32 %v6505_v53, %v5244_v17  ;;  %v5961_v17 = vld [vmem:[#allocation7 + $0x8] sm:$0xff]   ;;  %v5965_v19 = vld [vmem:[#allocation7] sm:$0xff]  }
 0x611   :  { %v5246_v22 = vpop.f32.mrf.mxu1 }
 0x612   :  { %6082 = vtanh.f32 %v2490_v21  ;;  %5330 = vmatpush3.bf16.msra.mxu0 %v5927_v18  ;;  %v5963_v18 = vld [vmem:[#allocation7 + $0x40] sm:$0xff]   ;;  %v5968_v21 = vld [vmem:[#allocation7 + $0x178] sm:$0xff]   ;;  %v5970_v22 = vld [vmem:[#allocation7 + $0xe8] sm:$0xff]  }
 0x613   :  { %5331 = vmatprep.subr.bf16.mxu0 %v5930_v20  ;;  %v5967_v20 = vld [vmem:[#allocation7 + $0xb0] sm:$0xff]  }
 0x616   :  { %5332 = vmatpush3.bf16.msra.mxu0 %v5931_v23  ;;  %v5971_v23 = vld [vmem:[#allocation7 + $0xa8] sm:$0xff]  }
 0x617   :  { %5333 = vmatprep.subr.bf16.mxu0 %v5934_v25  ;;  %v5974_v25 = vld [vmem:[#allocation7 + $0xe0] sm:$0xff]  }
 0x61a   :  { %5334 = vmatpush3.bf16.msra.mxu0 %v5935_v26  ;;  %v5975_v26 = vld [vmem:[#allocation7 + $0xa0] sm:$0xff]  }
 0x61b   :  { %5335 = vmatprep.subr.bf16.mxu0 %v5938_v28  ;;  %v5978_v28 = vld [vmem:[#allocation7 + $0xd8] sm:$0xff]  }
 0x61e   :  { %5336 = vmatpush3.bf16.msra.mxu0 %v5939_v29  ;;  %v5979_v29 = vld [vmem:[#allocation7 + $0x98] sm:$0xff]  }
 0x61f   :  { %v6083_v31 = vpop.eup %6082  ;;  %5337 = vmatprep.subr.bf16.mxu0 %v5942_v59  ;;  %v5982_v59 = vld [vmem:[#allocation7 + $0xd0] sm:$0xff]  }
 0x620   :  { %v2943_v32 = vpack.c.bf16 %v6083_v31, %v6083_v31  ;;  %v5986_v31 = vld [vmem:[#allocation7 + $0xc8] sm:$0xff]  }
 0x622   :  { %3104 = vmatprep.mubr.bf16.mxu1 %v2943_v32  ;;  %5338 = vmatpush3.bf16.msra.mxu0 %v5943_v30  ;;  %v5983_v30 = vld [vmem:[#allocation7 + $0x90] sm:$0xff]  }
 0x623   :  { %3105 = vmatmul.mubr.bf16.vlgmr.msra.gmra.mxu1 %v2836_v9  ;;  %5367 = vmatprep.subr.bf16.mxu0 %v5948_v0  ;;  %v5956_v9 = vld [vmem:[#allocation7 + $0x58] sm:$0xff]   ;;  %v5981_v0 = vld [vmem:[#allocation7 + $0x120] sm:$0xff]  }
 0x624   :  { %5346 = vmatpush3.bf16.msra.mxu1 %v5921_v33  ;;  %v5990_v33 = vld [vmem:[#allocation7 + $0xc0] sm:$0xff]  }
 0x625   :  { %5347 = vmatprep.subr.bf16.mxu1 %v5924_v34  ;;  %v5991_v34 = vld [vmem:[#allocation7 + $0x80] sm:$0xff]  }
 0x626   :  { %v5264_v36 = vpop.f32.mrf.mxu0 }
 0x628   :  { %v5265_v37 = vpop.f32.mrf.mxu0  ;;  %5348 = vmatpush3.bf16.msra.mxu1 %v5925_v7 }
 0x629   :  { %v5266_v39 = vadd.f32 %v5265_v37, %v5264_v36  ;;  %5349 = vmatprep.subr.bf16.mxu1 %v5928_v35 }
 0x62a   :  { %v5267_v41 = vpop.f32.mrf.mxu0 }
 0x62b   :  { %v2661_v43 = vadd.f32 %v6524_v42, %v5266_v39  ;;  %v5286_v44 = vpop.f32.mrf.mxu1  ;;  %v2835_v39 = vld [vmem:[#allocation2 + $0x7] sm:$0x1] }
 0x62c   :  { %v5268_v45 = vpop.f32.mrf.mxu0  ;;  %5350 = vmatpush3.bf16.msra.mxu1 %v5929_v38 }
 0x62d   :  { %6084 = vtanh.f32 %v2661_v43  ;;  %v5287_v47 = vpop.f32.mrf.mxu1  ;;  %5351 = vmatprep.subr.bf16.mxu1 %v5932_v40 }
 0x62e   :  { %v5288_v49 = vadd.f32 %v5287_v47, %v5286_v44 }
 0x62f   :  { %v5289_v50 = vpop.f32.mrf.mxu1 }
 0x630   :  { %v2832_v51 = vadd.f32 %v5288_v49, %v6475_v24  ;;  %5352 = vmatpush3.bf16.msra.mxu1 %v5933_v46  ;;  %v5969_v50 = vld [vmem:[#allocation7 + $0x138] sm:$0xff]  }
 0x631   :  { %v5290_v54 = vpop.f32.mrf.mxu1  ;;  %5353 = vmatprep.subr.bf16.mxu1 %v5936_v48 }
 0x632   :  { %6086 = vtanh.f32 %v2832_v51  ;;  %v5973_v54 = vld [vmem:[#allocation7 + $0x130] sm:$0xff]  }
 0x634   :  { %5354 = vmatpush3.bf16.msra.mxu1 %v5937_v52  ;;  %v5972_v52 = vld [vmem:[#allocation7 + $0x170] sm:$0xff]  }
 0x635   :  { %5355 = vmatprep.subr.bf16.mxu1 %v5940_v1  ;;  %v5976_v1 = vld [vmem:[#allocation7 + $0x168] sm:$0xff]  }
 0x638   :  { %5356 = vmatpush3.bf16.msra.mxu1 %v5941_v55 }
 0x639   :  { %5357 = vmatprep.subr.bf16.mxu1 %v5944_v56 }
 0x63a   :  { %v6085_v60 = vpop.eup %6084 }
 0x63b   :  { %v3114_v61 = vpack.c.bf16 %v6085_v60, %v6085_v60  ;;  %v5980_v60 = vld [vmem:[#allocation7 + $0x160] sm:$0xff]  }
 0x63c   :  { %5358 = vmatpush3.bf16.msra.mxu1 %v5945_v57  ;;  %v5977_v57 = vld [vmem:[#allocation7 + $0x128] sm:$0xff]  }
 0x63d   :  { %3275 = vmatprep.mubr.bf16.mxu0 %v3114_v61  ;;  %5359 = vmatprep.subr.bf16.mxu1 %v5946_v58 }
 0x63e   :  { %3276 = vmatmul.mubr.bf16.vlgmr.msra.gmra.mxu0 %v2943_v32  ;;  %v5987_v32 = vld [vmem:[#allocation7 + $0x88] sm:$0xff]  }
 0x63f   :  { %v6087_v24 = vpop.eup %6086  ;;  %5368 = vmatpush3.bf16.msra.mxu0 %v5949_v27 }
 0x640   :  { %2834 = vst [vmem:[#allocation3 + $0x3] sm:$0x1] %v6087_v24  ;;  %5360 = vmatpush3.bf16.msra.mxu1 %v5947_v62  ;;  %v3285_v63 = vpack.c.bf16 %v6087_v24, %v6087_v24  ;;  %5369 = vmatprep.subr.bf16.mxu0 %v5950_v2  ;;  %v5984_v2 = vld [vmem:[#allocation7 + $0x158] sm:$0xff]  }
 0x641   :  { %5389 = vmatprep.subr.bf16.mxu1 %v5962_v12  ;;  %v5992_v12 = vld [vmem:[#allocation7 + $0x148] sm:$0xff]  }
 0x642   :  { %3446 = vmatprep.mubr.bf16.mxu1 %v3285_v63 }
 0x643   :  { %3447 = vmatmul.mubr.bf16.vlgmr.msra.gmra.mxu1 %v3114_v61  ;;  %5370 = vmatpush3.bf16.msra.mxu0 %v5951_v3 }
 0x644   :  { %5371 = vmatprep.subr.bf16.mxu0 %v5952_v4  ;;  %5390 = vmatpush3.bf16.msra.mxu1 %v5964_v14  ;;  %v5994_v14 = vld [vmem:[#allocation7 + $0x140] sm:$0xff]  }
 0x645   :  { %5391 = vmatprep.subr.bf16.mxu1 %v5966_v16 }
 0x647   :  { %5372 = vmatpush3.bf16.msra.mxu0 %v5953_v5  ;;  %v6533_v5 = vld [vmem:[%s6552_s4 + $0x3] sm:$0x1] }
 0x648   :  { %5373 = vmatprep.subr.bf16.mxu0 %v5954_v6  ;;  %5392 = vmatpush3.bf16.msra.mxu1 %v5967_v20  ;;  %v5996_v20 = vld [vmem:[#allocation7 + $0xf8] sm:$0xff]  }
 0x649   :  { %5393 = vmatprep.subr.bf16.mxu1 %v5970_v22  ;;  %v5998_v22 = vld [vmem:[#allocation7 + $0xf0] sm:$0xff]  }
 0x64b   :  { %5374 = vmatpush3.bf16.msra.mxu0 %v5955_v8  ;;  %v5985_v8 = vld [vmem:[#allocation7 + $0x118] sm:$0xff]  }
 0x64c   :  { %5375 = vmatprep.subr.bf16.mxu0 %v5956_v9  ;;  %5394 = vmatpush3.bf16.msra.mxu1 %v5971_v23  ;;  %v5999_v23 = vld [vmem:[#allocation7 + $0xb0] sm:$0xff]  }
 0x64d   :  { %5395 = vmatprep.subr.bf16.mxu1 %v5974_v25  ;;  %v6000_v25 = vld [vmem:[#allocation7 + $0x178] sm:$0xff]  }
 0x64f   :  { %5376 = vmatpush3.bf16.msra.mxu0 %v5957_v10  ;;  %v5988_v10 = vld [vmem:[#allocation7 + $0x150] sm:$0xff]  }
 0x650   :  { %5377 = vmatprep.subr.bf16.mxu0 %v5958_v11  ;;  %5396 = vmatpush3.bf16.msra.mxu1 %v5975_v26  ;;  %v5989_v11 = vld [vmem:[#allocation7 + $0x110] sm:$0xff]   ;;  %v6001_v26 = vld [vmem:[#allocation7 + $0x138] sm:$0xff]  }
 0x651   :  { %5397 = vmatprep.subr.bf16.mxu1 %v5978_v28  ;;  %v6002_v28 = vld [vmem:[#allocation7 + $0xe8] sm:$0xff]  }
 0x653   :  { %5378 = vmatpush3.bf16.msra.mxu0 %v5959_v13  ;;  %v5993_v13 = vld [vmem:[#allocation7 + $0x108] sm:$0xff]  }
 0x654   :  { %5379 = vmatprep.subr.bf16.mxu0 %v5960_v15  ;;  %5398 = vmatpush3.bf16.msra.mxu1 %v5979_v29  ;;  %v6003_v29 = vld [vmem:[#allocation7 + $0xa8] sm:$0xff]  }
 0x655   :  { %5399 = vmatprep.subr.bf16.mxu1 %v5982_v59  ;;  %v6004_v59 = vld [vmem:[#allocation7 + $0x170] sm:$0xff]  }
 0x657   :  { %5380 = vmatpush3.bf16.msra.mxu0 %v5961_v17  ;;  %v5995_v17 = vld [vmem:[#allocation7 + $0x100] sm:$0xff]  }
 0x658   :  { %5381 = vmatprep.subr.bf16.mxu0 %v5963_v18  ;;  %5400 = vmatpush3.bf16.msra.mxu1 %v5983_v30  ;;  %v6005_v30 = vld [vmem:[#allocation7 + $0x130] sm:$0xff]  }
 0x659   :  { %5401 = vmatprep.subr.bf16.mxu1 %v5986_v31  ;;  %v6006_v31 = vld [vmem:[#allocation7 + $0xe0] sm:$0xff]  }
 0x65b   :  { %5382 = vmatpush3.bf16.msra.mxu0 %v5965_v19 }
 0x65c   :  { %5411 = vmatprep.subr.bf16.mxu0 %v5968_v21  ;;  %5402 = vmatpush3.bf16.msra.mxu1 %v5987_v32  ;;  %v5997_v21 = vld [vmem:[#allocation7 + $0xb8] sm:$0xff]   ;;  %v6007_v32 = vld [vmem:[#allocation7 + $0xa0] sm:$0xff]  }
 0x65d   :  { %5403 = vmatprep.subr.bf16.mxu1 %v5990_v33  ;;  %v6008_v33 = vld [vmem:[#allocation7 + $0x168] sm:$0xff]  }
 0x660   :  { %5404 = vmatpush3.bf16.msra.mxu1 %v5991_v34  ;;  %v6009_v34 = vld [vmem:[#allocation7 + $0x128] sm:$0xff]  }
 0x661   :  { %5433 = vmatprep.subr.bf16.mxu1 %v5996_v20  ;;  %v6034_v20 = vld [vmem:[#allocation7 + $0x160] sm:$0xff]  }
 0x6c5   :  { %v2935_v7 = vpop.f32.mrf.mxu0 }
 0x6c6   :  { %v2941_v40 = vadd.f32 %v2935_v7, %v2835_v39  ;;  %v6010_v7 = vld [vmem:[#allocation7 + $0xd8] sm:$0xff]   ;;  %v6015_v39 = vld [vmem:[#allocation7 + $0x90] sm:$0xff]  }
 0x6c7   :  { %v5657_v35 = vpop.f32.mrf.mxu0 }
 0x6c8   :  { %6088 = vtanh.f32 %v2941_v40  ;;  %v6011_v35 = vld [vmem:[#allocation7 + $0x98] sm:$0xff]  }
 0x6c9   :  { %v2938_v36 = vpop.f32.mrf.mxu0  ;;  %v6016_v40 = vld [vmem:[#allocation7 + $0x158] sm:$0xff]  }
 0x6ca   :  { %v6012_v36 = vld [vmem:[#allocation7 + $0x160] sm:$0xff]  }
 0x6cb   :  { %v5658_v37 = vpop.f32.mrf.mxu0 }
 0x6cc   :  { %v6013_v37 = vld [vmem:[#allocation7 + $0x120] sm:$0xff]  }
 0x6d5   :  { %v6089_v47 = vpop.eup %6088 }
 0x6d6   :  { %v3457_v51 = vpack.c.bf16 %v6089_v47, %v6089_v47  ;;  %v6022_v47 = vld [vmem:[#allocation7 + $0xc0] sm:$0xff]  }
 0x6e3   :  { %v5317_v38 = vpop.f32.mrf.mxu1 }
 0x6e5   :  { %v5318_v41 = vpop.f32.mrf.mxu1 }
 0x6e6   :  { %v5319_v43 = vadd.f32 %v5318_v41, %v5317_v38  ;;  %v6014_v38 = vld [vmem:[#allocation7 + $0xd0] sm:$0xff]   ;;  %v6017_v41 = vld [vmem:[#allocation7 + $0x118] sm:$0xff]  }
 0x6e7   :  { %v5320_v44 = vpop.f32.mrf.mxu1 }
 0x6e8   :  { %v3112_v45 = vadd.f32 %v6505_v53, %v5319_v43  ;;  %v6018_v43 = vld [vmem:[#allocation7 + $0xc8] sm:$0xff]  }
 0x6e9   :  { %v5321_v46 = vpop.f32.mrf.mxu1  ;;  %v6019_v44 = vld [vmem:[#allocation7 + $0x88] sm:$0xff]  }
 0x6ea   :  { %6090 = vtanh.f32 %v3112_v45  ;;  %v6020_v45 = vld [vmem:[#allocation7 + $0x150] sm:$0xff]  }
 0x6eb   :  { %v6021_v46 = vld [vmem:[#allocation7 + $0x110] sm:$0xff]  }
 0x6f7   :  { %v6091_v48 = vpop.eup %6090 }
 0x6f8   :  { %v3458_v49 = vpack.c.bf16 %v6091_v48, %v6091_v48  ;;  %v6023_v48 = vld [vmem:[#allocation7 + $0x80] sm:$0xff]  }
 0x6fa   :  { %3619 = vmatprep.mubr.bf16.mxu0 %v3458_v49 }
 0x6fb   :  { %3620 = vmatmul.mubr.bf16.vlgmr.msra.gmra.mxu0 %v3457_v51  ;;  %v6026_v51 = vld [vmem:[#allocation7 + $0x140] sm:$0xff]  }
 0x6fc   :  { %5412 = vmatpush3.bf16.msra.mxu0 %v5969_v50  ;;  %v6025_v50 = vld [vmem:[#allocation7 + $0x108] sm:$0xff]  }
 0x6fd   :  { %5413 = vmatprep.subr.bf16.mxu0 %v5972_v52  ;;  %v6027_v52 = vld [vmem:[#allocation7 + $0x100] sm:$0xff]  }
 0x6fe   :  { %v5339_v55 = vpop.f32.mrf.mxu0 }
 0x700   :  { %v5340_v56 = vpop.f32.mrf.mxu0  ;;  %5414 = vmatpush3.bf16.msra.mxu0 %v5973_v54  ;;  %v6028_v54 = vld [vmem:[#allocation7 + $0x178] sm:$0xff]  }
 0x701   :  { %v5341_v58 = vadd.f32 %v5340_v56, %v5339_v55  ;;  %5415 = vmatprep.subr.bf16.mxu0 %v5976_v1 }
 0x702   :  { %v5342_v61 = vpop.f32.mrf.mxu0 }
 0x703   :  { %v3283_v62 = vadd.f32 %v6524_v42, %v5341_v58  ;;  %v5361_v24 = vpop.f32.mrf.mxu1 }
 0x704   :  { %v5343_v63 = vpop.f32.mrf.mxu0  ;;  %5416 = vmatpush3.bf16.msra.mxu0 %v5977_v57 }
 0x705   :  { %6092 = vtanh.f32 %v3283_v62  ;;  %v5362_v27 = vpop.f32.mrf.mxu1  ;;  %5417 = vmatprep.subr.bf16.mxu0 %v5980_v60 }
 0x706   :  { %v5363_v3 = vadd.f32 %v5362_v27, %v5361_v24 }
 0x707   :  { %v5364_v4 = vpop.f32.mrf.mxu1 }
 0x708   :  { %v3454_v6 = vadd.f32 %v6533_v5, %v5363_v3  ;;  %5418 = vmatpush3.bf16.msra.mxu0 %v5981_v0 }
 0x709   :  { %v5365_v9 = vpop.f32.mrf.mxu1  ;;  %5419 = vmatprep.subr.bf16.mxu0 %v5984_v2 }
 0x70a   :  { %6094 = vtanh.f32 %v3454_v6 }
 0x70c   :  { %5420 = vmatpush3.bf16.msra.mxu0 %v5985_v8 }
 0x70d   :  { %5421 = vmatprep.subr.bf16.mxu0 %v5988_v10 }
 0x710   :  { %5422 = vmatpush3.bf16.msra.mxu0 %v5989_v11 }
 0x711   :  { %5423 = vmatprep.subr.bf16.mxu0 %v5992_v12 }
 0x712   :  { %v6093_v15 = vpop.eup %6092 }
 0x713   :  { %v3629_v16 = vpack.c.bf16 %v6093_v15, %v6093_v15 }
 0x714   :  { %5424 = vmatpush3.bf16.msra.mxu0 %v5993_v13 }
 0x715   :  { %3790 = vmatprep.mubr.bf16.mxu1 %v3629_v16  ;;  %5425 = vmatprep.subr.bf16.mxu0 %v5994_v14 }
 0x716   :  { %3791 = vmatmul.mubr.bf16.vlgmr.msra.gmra.mxu1 %v3458_v49  ;;  %v6024_v49 = vld [vmem:[#allocation7 + $0x148] sm:$0xff]  }
 0x717   :  { %v6095_v18 = vpop.eup %6094  ;;  %5434 = vmatpush3.bf16.msra.mxu1 %v5997_v21  ;;  %v6035_v21 = vld [vmem:[#allocation7 + $0x120] sm:$0xff]  }
 0x718   :  { %3456 = vst [vmem:[#allocation3 + $0x4] sm:$0x1] %v6095_v18  ;;  %5426 = vmatpush3.bf16.msra.mxu0 %v5995_v17  ;;  %v3800_v19 = vpack.c.bf16 %v6095_v18, %v6095_v18  ;;  %5435 = vmatprep.subr.bf16.mxu1 %v5998_v22  ;;  %v6031_v17 = vld [vmem:[#allocation7 + $0x130] sm:$0xff]   ;;  %v6032_v18 = vld [vmem:[#allocation7 + $0x168] sm:$0xff]   ;;  %v6036_v22 = vld [vmem:[#allocation7 + $0x158] sm:$0xff]  }
 0x719   :  { %5455 = vmatprep.subr.bf16.mxu0 %v6000_v25  ;;  %v6038_v25 = vld [vmem:[#allocation7 + $0x150] sm:$0xff]  }
 0x71a   :  { %3961 = vmatprep.mubr.bf16.mxu0 %v3800_v19  ;;  %v6033_v19 = vld [vmem:[#allocation7 + $0x128] sm:$0xff]  }
 0x71b   :  { %3962 = vmatmul.mubr.bf16.vlgmr.msra.gmra.mxu0 %v3629_v16  ;;  %5436 = vmatpush3.bf16.msra.mxu1 %v5999_v23  ;;  %v6030_v16 = vld [vmem:[#allocation7 + $0x170] sm:$0xff]   ;;  %v6037_v23 = vld [vmem:[#allocation7 + $0x118] sm:$0xff]  }
 0x71c   :  { %5456 = vmatpush3.bf16.msra.mxu0 %v6001_v26  ;;  %5437 = vmatprep.subr.bf16.mxu1 %v6002_v28  ;;  %v6039_v26 = vld [vmem:[#allocation7 + $0x110] sm:$0xff]   ;;  %v6040_v28 = vld [vmem:[#allocation7 + $0x148] sm:$0xff]  }
 0x71d   :  { %5457 = vmatprep.subr.bf16.mxu0 %v6004_v59  ;;  %v6042_v59 = vld [vmem:[#allocation7 + $0x140] sm:$0xff]  }
 0x71f   :  { %5438 = vmatpush3.bf16.msra.mxu1 %v6003_v29  ;;  %v6041_v29 = vld [vmem:[#allocation7 + $0x108] sm:$0xff]  }
 0x720   :  { %5458 = vmatpush3.bf16.msra.mxu0 %v6005_v30  ;;  %5439 = vmatprep.subr.bf16.mxu1 %v6006_v31  ;;  %v6043_v30 = vld [vmem:[#allocation7 + $0x100] sm:$0xff]  }
 0x721   :  { %5459 = vmatprep.subr.bf16.mxu0 %v6008_v33 }
 0x723   :  { %5440 = vmatpush3.bf16.msra.mxu1 %v6007_v32 }
 0x724   :  { %5460 = vmatpush3.bf16.msra.mxu0 %v6009_v34  ;;  %5441 = vmatprep.subr.bf16.mxu1 %v6010_v7 }
 0x725   :  { %5461 = vmatprep.subr.bf16.mxu0 %v6012_v36 }
 0x727   :  { %5442 = vmatpush3.bf16.msra.mxu1 %v6011_v35 }
 0x728   :  { %5462 = vmatpush3.bf16.msra.mxu0 %v6013_v37  ;;  %5443 = vmatprep.subr.bf16.mxu1 %v6014_v38 }
 0x729   :  { %5463 = vmatprep.subr.bf16.mxu0 %v6016_v40 }
 0x72b   :  { %5444 = vmatpush3.bf16.msra.mxu1 %v6015_v39 }
 0x72c   :  { %5464 = vmatpush3.bf16.msra.mxu0 %v6017_v41  ;;  %5445 = vmatprep.subr.bf16.mxu1 %v6018_v43 }
 0x72d   :  { %5465 = vmatprep.subr.bf16.mxu0 %v6020_v45 }
 0x72f   :  { %5446 = vmatpush3.bf16.msra.mxu1 %v6019_v44 }
 0x730   :  { %5466 = vmatpush3.bf16.msra.mxu0 %v6021_v46  ;;  %5447 = vmatprep.subr.bf16.mxu1 %v6022_v47 }
 0x731   :  { %5467 = vmatprep.subr.bf16.mxu0 %v6024_v49 }
 0x733   :  { %5448 = vmatpush3.bf16.msra.mxu1 %v6023_v48 }
 0x734   :  { %5468 = vmatpush3.bf16.msra.mxu0 %v6025_v50  ;;  %5477 = vmatprep.subr.bf16.mxu1 %v6028_v54  ;;  %v4897_v54 = vld [vmem:[%s6553_s5] ss:$0 sm:$0xff] }
 0x735   :  { %5469 = vmatprep.subr.bf16.mxu0 %v6026_v51 }
 0x738   :  { %5470 = vmatpush3.bf16.msra.mxu0 %v6027_v52 }
 0x7bb   :  { %v5383_v1 = vpop.f32.mrf.mxu0 }
 0x7bd   :  { %v5384_v55 = vpop.f32.mrf.mxu0 }
 0x7be   :  { %v5385_v58 = vadd.f32 %v5384_v55, %v5383_v1 }
 0x7bf   :  { %v5386_v56 = vpop.f32.mrf.mxu0 }
 0x7c0   :  { %v3627_v61 = vadd.f32 %v6505_v53, %v5385_v58  ;;  %v6029_v53 = vld [vmem:[#allocation7 + $0x138] sm:$0xff]  }
 0x7c1   :  { %v5387_v57 = vpop.f32.mrf.mxu0  ;;  %v4898_v56 = vld [vmem:[#allocation4] ss:$0 sm:$0xff] }
 0x7c2   :  { %6096 = vtanh.f32 %v3627_v61 }
 0x7cf   :  { %v6097_v10 = vpop.eup %6096 }
 0x7d0   :  { %v3972_v13 = vpack.c.bf16 %v6097_v10, %v6097_v10 }
 0x7d6   :  { %v5405_v60 = vpop.f32.mrf.mxu1 }
 0x7d8   :  { %v5406_v62 = vpop.f32.mrf.mxu1 }
 0x7d9   :  { %v5407_v24 = vadd.f32 %v5406_v62, %v5405_v60 }
 0x7da   :  { %v5408_v63 = vpop.f32.mrf.mxu1 }
 0x7db   :  { %v3798_v0 = vadd.f32 %v6524_v42, %v5407_v24  ;;  %v5427_v27 = vpop.f32.mrf.mxu0 }
 0x7dc   :  { %v5409_v2 = vpop.f32.mrf.mxu1 }
 0x7dd   :  { %6098 = vtanh.f32 %v3798_v0  ;;  %v5428_v3 = vpop.f32.mrf.mxu0 }
 0x7de   :  { %v5429_v4 = vadd.f32 %v5428_v3, %v5427_v27 }
 0x7df   :  { %v5430_v6 = vpop.f32.mrf.mxu0 }
 0x7e0   :  { %v3969_v8 = vadd.f32 %v6533_v5, %v5429_v4 }
 0x7e1   :  { %v5431_v9 = vpop.f32.mrf.mxu0 }
 0x7e2   :  { %6100 = vtanh.f32 %v3969_v8 }
 0x7ea   :  { %v6099_v11 = vpop.eup %6098 }
 0x7eb   :  { %v3973_v12 = vpack.c.bf16 %v6099_v11, %v6099_v11 }
 0x7ed   :  { %4134 = vmatprep.mubr.bf16.mxu1 %v3973_v12 }
 0x7ee   :  { %4135 = vmatmul.mubr.bf16.vlgmr.msra.gmra.mxu1 %v3972_v13 }
 0x7ef   :  { %v6101_v14 = vpop.eup %6100  ;;  %5478 = vmatpush3.bf16.msra.mxu1 %v6029_v53 }
 0x7f0   :  { %3971 = vst [vmem:[#allocation3 + $0x5] sm:$0x1] %v6101_v14  ;;  %v4144_v15 = vpack.c.bf16 %v6101_v14, %v6101_v14  ;;  %5479 = vmatprep.subr.bf16.mxu1 %v6030_v16 }
 0x7f2   :  { %4305 = vmatprep.mubr.bf16.mxu0 %v4144_v15 }
 0x7f3   :  { %4306 = vmatmul.mubr.bf16.vlgmr.msra.gmra.mxu0 %v3973_v12  ;;  %5480 = vmatpush3.bf16.msra.mxu1 %v6031_v17 }
 0x7f4   :  { %5481 = vmatprep.subr.bf16.mxu1 %v6032_v18 }
 0x7f7   :  { %5482 = vmatpush3.bf16.msra.mxu1 %v6033_v19 }
 0x7f8   :  { %5483 = vmatprep.subr.bf16.mxu1 %v6034_v20 }
 0x7fb   :  { %5484 = vmatpush3.bf16.msra.mxu1 %v6035_v21 }
 0x7fc   :  { %5485 = vmatprep.subr.bf16.mxu1 %v6036_v22 }
 0x7ff   :  { %5486 = vmatpush3.bf16.msra.mxu1 %v6037_v23 }
 0x800   :  { %5487 = vmatprep.subr.bf16.mxu1 %v6038_v25 }
 0x803   :  { %5488 = vmatpush3.bf16.msra.mxu1 %v6039_v26 }
 0x804   :  { %5489 = vmatprep.subr.bf16.mxu1 %v6040_v28 }
 0x807   :  { %5490 = vmatpush3.bf16.msra.mxu1 %v6041_v29 }
 0x808   :  { %5491 = vmatprep.subr.bf16.mxu1 %v6042_v59 }
 0x80b   :  { %5492 = vmatpush3.bf16.msra.mxu1 %v6043_v30 }
 0x8ae   :  { %v5449_v31 = vpop.f32.mrf.mxu1 }
 0x8b0   :  { %v5450_v32 = vpop.f32.mrf.mxu1 }
 0x8b1   :  { %v5451_v33 = vadd.f32 %v5450_v32, %v5449_v31 }
 0x8b2   :  { %v5452_v34 = vpop.f32.mrf.mxu1 }
 0x8b3   :  { %v5471_v7 = vpop.f32.mrf.mxu0  ;;  %v4142_v36 = vadd.f32 %v6524_v42, %v5451_v33 }
 0x8b4   :  { %v5453_v35 = vpop.f32.mrf.mxu1 }
 0x8b5   :  { %v5472_v37 = vpop.f32.mrf.mxu0  ;;  %6102 = vtanh.f32 %v4142_v36 }
 0x8b6   :  { %v5473_v38 = vadd.f32 %v5472_v37, %v5471_v7 }
 0x8b7   :  { %v5474_v39 = vpop.f32.mrf.mxu0 }
 0x8b8   :  { %v4313_v40 = vadd.f32 %v6533_v5, %v5473_v38 }
 0x8b9   :  { %v5475_v41 = vpop.f32.mrf.mxu0 }
 0x8ba   :  { %6104 = vtanh.f32 %v4313_v40 }
 0x8c2   :  { %v6103_v43 = vpop.eup %6102 }
 0x8c3   :  { %v4316_v46 = vpack.c.bf16 %v6103_v43, %v6103_v43 }
 0x8c7   :  { %v6105_v44 = vpop.eup %6104 }
 0x8c8   :  { %4315 = vst [vmem:[#allocation3 + $0x6] sm:$0x1] %v6105_v44  ;;  %v4317_v45 = vpack.c.bf16 %v6105_v44, %v6105_v44 }
 0x8ca   :  { %4478 = vmatprep.mubr.bf16.mxu1 %v4317_v45 }
 0x8cb   :  { %4479 = vmatmul.mubr.bf16.vlgmr.msra.gmra.mxu1 %v4316_v46 }
 0x98b   :  { %v5493_v47 = vpop.f32.mrf.mxu1 }
 0x98d   :  { %v5494_v48 = vpop.f32.mrf.mxu1 }
 0x98e   :  { %v5495_v49 = vadd.f32 %v5494_v48, %v5493_v47 }
 0x98f   :  { %v5496_v50 = vpop.f32.mrf.mxu1 }
 0x990   :  { %v4486_v42 = vadd.f32 %v6533_v5, %v5495_v49 }
 0x991   :  { %v5497_v51 = vpop.f32.mrf.mxu1 }
 0x992   :  { %6106 = vtanh.f32 %v4486_v42 }
 0x99f   :  { %v6107_v52 = vpop.eup %6106 }
 0x9a0   :  { %4488 = vst [vmem:[#allocation3 + $0x7] sm:$0x1] %v6107_v52 }
 0x9a7   :  { %v4489_v1 = vld [vmem:[#allocation3] sm:$0xff] }
 0x9a8   :  { %v4497_v55 = vmul.f32 %v4897_v54, %v4489_v1 }
 0x9aa   :  { %4498 = vadd.xlane.f32.xlu0 %v4497_v55 }
 0xa33   :  { %v4499_v57 = vpop.xlane.xlu0 %4498 }
 0xa34   :  { %v4507_v58 = vadd.f32 %v4898_v56, %v4499_v57 }
 0xa36   :  { %4509 = vst.msk [vmem:[%s6555_s7] sm:$0xff] %vm4508_vm1, %v4507_v58 }
 0xa37   :  { %4514 = vsyncpa [#allocation6], 1 }
 0xa38   :  { %4515 = vsyncpa [#allocation8], 1 }

</bundles_post_ra>
